<compile_context>
chip_gen: v7x
topology: tpu7x:2x2x1
jax: 0.10.0
libtpu: 0.0.40
codegen_flags: <defaults>
</compile_context>

<pallas_src>
import functools

import numpy as np
import jax
import jax.numpy as jnp
from jax.experimental import pallas as pl
from jax.experimental.pallas import tpu as pltpu

LN_EPS = 1e-5


# ----------------------------------------------------------------------------
# Small helpers (host / JAX glue)
# ----------------------------------------------------------------------------
def _window_partition(x, ws):
    """(B, H, W, C) -> (B, nW, ws*ws, C), same ordering as the PyTorch helper."""
    B, H, W, C = x.shape
    x = x.reshape(B, H // ws, ws, W // ws, ws, C)
    x = x.transpose(0, 1, 3, 2, 4, 5)
    return x.reshape(B, (H // ws) * (W // ws), ws * ws, C)


def _window_reverse(wins, ws, H, W):
    """(B, nW, ws*ws, C) -> (B, H, W, C)."""
    B = wins.shape[0]
    C = wins.shape[-1]
    x = wins.reshape(B, H // ws, W // ws, ws, ws, C)
    x = x.transpose(0, 1, 3, 2, 4, 5)
    return x.reshape(B, H, W, C)


def _relative_position_index(ws):
    """Same construction as the PyTorch buffer. Returns (N, N) int array."""
    coords = np.stack(np.meshgrid(np.arange(ws), np.arange(ws), indexing="ij"))
    cf = coords.reshape(2, -1)
    rel = (cf[:, :, None] - cf[:, None, :]).transpose(1, 2, 0).astype(np.int64)
    rel[:, :, 0] += ws - 1
    rel[:, :, 1] += ws - 1
    rel[:, :, 0] *= 2 * ws - 1
    return rel.sum(-1)  # (N, N)


def _relative_position_bias(table, ws, num_heads):
    N = ws * ws
    idx = _relative_position_index(ws).reshape(-1)
    bias = table[idx].reshape(N, N, num_heads)
    return bias.transpose(2, 0, 1).astype(jnp.float32)  # (nh, N, N)


def _shift_attn_mask(Hp, Wp, ws, ss):
    """(nW, N, N) additive mask (0 / -100) for shifted windows."""
    img = np.zeros((1, Hp, Wp, 1), np.float32)
    cnt = 0
    for hsl in (slice(0, -ws), slice(-ws, -ss), slice(-ss, None)):
        for wsl in (slice(0, -ws), slice(-ws, -ss), slice(-ss, None)):
            img[:, hsl, wsl, :] = cnt
            cnt += 1
    mw = img.reshape(1, Hp // ws, ws, Wp // ws, ws, 1)
    mw = mw.transpose(0, 1, 3, 2, 4, 5).reshape(-1, ws * ws)
    am = mw[:, None, :] - mw[:, :, None]
    am = np.where(am != 0, -100.0, 0.0).astype(np.float32)
    return jnp.asarray(am)


def _erf(x):
    """Abramowitz & Stegun 7.1.26 (exp-only, max abs err ~1.5e-7)."""
    a1, a2, a3, a4, a5 = 0.254829592, -0.284496736, 1.421413741, -1.453152027, 1.061405429
    p = 0.3275911
    s = jnp.sign(x)
    ax = jnp.abs(x)
    t = 1.0 / (1.0 + p * ax)
    poly = ((((a5 * t + a4) * t + a3) * t + a2) * t + a1) * t
    return s * (1.0 - poly * jnp.exp(-ax * ax))


def _gelu_exact(x):
    return 0.5 * x * (1.0 + _erf(x * 0.7071067811865476))


# ----------------------------------------------------------------------------
# Kernel 1: norm1 + window attention (qkv, bias/mask, softmax, proj)
# ----------------------------------------------------------------------------
def _win_attn_kernel(x_ref, pm_ref, g1_ref, b1_ref, wqkv_ref, bqkv_ref,
                     bias_ref, mask_ref, wproj_ref, bproj_ref, o_ref,
                     *, num_heads, scale):
    _, nW, N, C = x_ref.shape
    hd = C // num_heads

    # ---- norm1 (statistics in f32) ----
    x = x_ref[0].reshape(nW * N, C).astype(jnp.float32)
    mean = jnp.mean(x, axis=-1, keepdims=True)
    var = jnp.mean((x - mean) ** 2, axis=-1, keepdims=True)
    xn = (x - mean) * jax.lax.rsqrt(var + LN_EPS)
    xn = xn * g1_ref[...] + b1_ref[...]
    # zero-out padded tokens so they enter qkv as exact zeros (matches F.pad
    # applied *after* norm1 in the PyTorch forward).
    xn = xn * pm_ref[...]

    # ---- qkv projection (MXU) ----
    qkv = jnp.dot(xn, wqkv_ref[...], preferred_element_type=jnp.float32)
    qkv = qkv + bqkv_ref[...]                       # (nW*N, 3C)

    mask = mask_ref[...]                            # (nW, N, N)
    acc = jnp.zeros((nW * N, C), jnp.float32)

    for h in range(num_heads):                      # small static loop over heads
        q = qkv[:, h * hd:(h + 1) * hd].reshape(nW, N, hd) * scale
        k = qkv[:, C + h * hd: C + (h + 1) * hd].reshape(nW, N, hd)
        v = qkv[:, 2 * C + h * hd: 2 * C + (h + 1) * hd].reshape(nW, N, hd)

        a = jnp.einsum("wnd,wmd->wnm", q, k, preferred_element_type=jnp.float32)
        a = a + bias_ref[h][None, :, :] + mask

        a = a - jnp.max(a, axis=-1, keepdims=True)
        p = jnp.exp(a)
        p = p / jnp.sum(p, axis=-1, keepdims=True)

        ctx = jnp.einsum("wnm,wmd->wnd", p, v, preferred_element_type=jnp.float32)
        # fold head-concat into the output projection: out = sum_h ctx_h @ Wp[h]
        acc = acc + jnp.dot(ctx.reshape(nW * N, hd),
                            wproj_ref[h * hd:(h + 1) * hd, :],
                            preferred_element_type=jnp.float32)

    out = acc + bproj_ref[...]
    o_ref[0] = out.reshape(nW, N, C).astype(o_ref.dtype)


# ----------------------------------------------------------------------------
# Kernel 2: residual + norm2 + MLP (fc1 -> GELU -> fc2) + residual
# ----------------------------------------------------------------------------
def _mlp_kernel(s_ref, a_ref, g2_ref, b2_ref, w1_ref, c1_ref, w2_ref, c2_ref, o_ref):
    h = s_ref[...].astype(jnp.float32) + a_ref[...].astype(jnp.float32)  # residual #1
    mean = jnp.mean(h, axis=-1, keepdims=True)
    var = jnp.mean((h - mean) ** 2, axis=-1, keepdims=True)
    xn = (h - mean) * jax.lax.rsqrt(var + LN_EPS)
    xn = xn * g2_ref[...] + b2_ref[...]
    u = jnp.dot(xn, w1_ref[...], preferred_element_type=jnp.float32) + c1_ref[...]
    u = _gelu_exact(u)
    y = jnp.dot(u, w2_ref[...], preferred_element_type=jnp.float32) + c2_ref[...]
    o_ref[...] = (h + y).astype(o_ref.dtype)                              # residual #2


# ----------------------------------------------------------------------------
# Wrapper
# ----------------------------------------------------------------------------
def swin_block_forward(x, params, input_resolution, num_heads,
                       window_size=7, shift_size=0, *, tile_rows=1024):
    """
    x: (B, H*W, C).  params holds weights in (in, out) layout:
      g1,b1,g2,b2:(C,), wqkv:(C,3C), bqkv:(3C,), wproj:(C,C), bproj:(C,),
      rpb_table:((2ws-1)^2, nh), w1:(C,Ch), c1:(Ch,), w2:(Ch,C), c2:(C,)
    """
    H, W = input_resolution
    B, L, C = x.shape
    assert L == H * W
    ws, ss = window_size, shift_size
    if min(H, W) <= ws:            # module logic: window covers whole resolution
        ss = 0
        ws = min(H, W)
    nh = num_heads
    hd = C // nh
    scale = hd ** (-0.5)
    N = ws * ws

    # ---- spatial data movement (pad / cyclic shift / window partition) ----
    xs = x.reshape(B, H, W, C)
    pad_b = (ws - H % ws) % ws
    pad_r = (ws - W % ws) % ws
    tok = jnp.ones((1, H, W, 1), jnp.float32)
    if pad_b or pad_r:
        xs = jnp.pad(xs, ((0, 0), (0, pad_b), (0, pad_r), (0, 0)))
        tok = jnp.pad(tok, ((0, 0), (0, pad_b), (0, pad_r), (0, 0)))
    Hp, Wp = H + pad_b, W + pad_r
    if ss > 0:
        xs = jnp.roll(xs, (-ss, -ss), axis=(1, 2))
        tok = jnp.roll(tok, (-ss, -ss), axis=(1, 2))

    xw = _window_partition(xs, ws)                     # (B, nW, N, C)
    nW = xw.shape[1]
    padmask = _window_partition(tok, ws).reshape(nW * N, 1)

    bias = _relative_position_bias(params["rpb_table"], ws, nh)   # (nh, N, N)
    if ss > 0:
        amask = _shift_attn_mask(Hp, Wp, ws, ss)                  # (nW, N, N)
    else:
        amask = jnp.zeros((nW, N, N), jnp.float32)

    g1 = params["g1"].reshape(1, C).astype(jnp.float32)
    b1 = params["b1"].reshape(1, C).astype(jnp.float32)
    bqkv = params["bqkv"].reshape(1, 3 * C)
    bproj = params["bproj"].reshape(1, C)

    attn_kernel = functools.partial(_win_attn_kernel, num_heads=nh, scale=scale)
    attn_w = pl.pallas_call(
        attn_kernel,
        out_shape=jax.ShapeDtypeStruct((B, nW, N, C), x.dtype),
        grid_spec=pltpu.PrefetchScalarGridSpec(
            num_scalar_prefetch=0,
            grid=(B,),
            in_specs=[
                pl.BlockSpec((1, nW, N, C), lambda b: (b, 0, 0, 0)),
                pl.BlockSpec((nW * N, 1), lambda b: (0, 0)),
                pl.BlockSpec((1, C), lambda b: (0, 0)),
                pl.BlockSpec((1, C), lambda b: (0, 0)),
                pl.BlockSpec((C, 3 * C), lambda b: (0, 0)),
                pl.BlockSpec((1, 3 * C), lambda b: (0, 0)),
                pl.BlockSpec((nh, N, N), lambda b: (0, 0, 0)),
                pl.BlockSpec((nW, N, N), lambda b: (0, 0, 0)),
                pl.BlockSpec((C, C), lambda b: (0, 0)),
                pl.BlockSpec((1, C), lambda b: (0, 0)),
            ],
            out_specs=pl.BlockSpec((1, nW, N, C), lambda b: (b, 0, 0, 0)),
        ),
        compiler_params=pltpu.CompilerParams(dimension_semantics=("parallel",)),
    )(xw, padmask, g1, b1, params["wqkv"], bqkv, bias, amask,
      params["wproj"], bproj)

    # ---- window reverse / un-shift / crop (pure data movement in JAX glue) ----
    xs = _window_reverse(attn_w, ws, Hp, Wp)
    if ss > 0:
        xs = jnp.roll(xs, (ss, ss), axis=(1, 2))
    if pad_b or pad_r:
        xs = xs[:, :H, :W, :]
    attn_out = xs.reshape(B * L, C)
    shortcut = x.reshape(B * L, C)

    # ---- fused residual + norm2 + MLP + residual ----
    rows = B * L
    tr = min(tile_rows, rows)                  # no jnp.pad: cdiv grid + ragged tile
    Ch = params["w1"].shape[1]
    g2 = params["g2"].reshape(1, C).astype(jnp.float32)
    b2 = params["b2"].reshape(1, C).astype(jnp.float32)
    c1 = params["c1"].reshape(1, Ch)
    c2 = params["c2"].reshape(1, C)

    out = pl.pallas_call(
        _mlp_kernel,
        out_shape=jax.ShapeDtypeStruct((rows, C), x.dtype),
        grid_spec=pltpu.PrefetchScalarGridSpec(
            num_scalar_prefetch=0,
            grid=(pl.cdiv(rows, tr),),
            in_specs=[
                pl.BlockSpec((tr, C), lambda i: (i, 0)),
                pl.BlockSpec((tr, C), lambda i: (i, 0)),
                pl.BlockSpec((1, C), lambda i: (0, 0)),
                pl.BlockSpec((1, C), lambda i: (0, 0)),
                pl.BlockSpec((C, Ch), lambda i: (0, 0)),
                pl.BlockSpec((1, Ch), lambda i: (0, 0)),
                pl.BlockSpec((Ch, C), lambda i: (0, 0)),
                pl.BlockSpec((1, C), lambda i: (0, 0)),
            ],
            out_specs=pl.BlockSpec((tr, C), lambda i: (i, 0)),
        ),
        compiler_params=pltpu.CompilerParams(dimension_semantics=("parallel",)),
    )(shortcut, attn_out, g2, b2, params["w1"], c1, params["w2"], c2)

    return out.reshape(B, L, C)


# ----------------------------------------------------------------------------
# Pure-JAX reference (mirrors the PyTorch forward exactly)
# ----------------------------------------------------------------------------
def _layernorm(x, g, b):
    mean = jnp.mean(x, -1, keepdims=True)
    var = jnp.mean((x - mean) ** 2, -1, keepdims=True)
    return (x - mean) * jax.lax.rsqrt(var + LN_EPS) * g + b


def _reference(x, p, input_resolution, num_heads, window_size, shift_size):
    H, W = input_resolution
    B, L, C = x.shape
    ws, ss = window_size, shift_size
    if min(H, W) <= ws:
        ss = 0
        ws = min(H, W)
    nh = num_heads
    hd = C // nh
    scale = hd ** (-0.5)
    N = ws * ws

    shortcut = x
    xn = _layernorm(x, p["g1"], p["b1"]).reshape(B, H, W, C)
    pad_b = (ws - H % ws) % ws
    pad_r = (ws - W % ws) % ws
    if pad_b or pad_r:
        xn = jnp.pad(xn, ((0, 0), (0, pad_b), (0, pad_r), (0, 0)))
    Hp, Wp = H + pad_b, W + pad_r
    if ss > 0:
        xn = jnp.roll(xn, (-ss, -ss), axis=(1, 2))
    xw = _window_partition(xn, ws)                                  # (B,nW,N,C)
    nW = xw.shape[1]

    qkv = jnp.einsum("bwnc,cd->bwnd", xw, p["wqkv"]) + p["bqkv"]
    q, k, v = qkv[..., :C], qkv[..., C:2 * C], qkv[..., 2 * C:]

    def heads(t):
        return t.reshape(B, nW, N, nh, hd).transpose(0, 1, 3, 2, 4)  # (B,nW,nh,N,hd)

    q, k, v = heads(q) * scale, heads(k), heads(v)
    attn = jnp.einsum("bwhnd,bwhmd->bwhnm", q, k)
    attn = attn + _relative_position_bias(p["rpb_table"], ws, nh)[None, None]
    if ss > 0:
        attn = attn + _shift_attn_mask(Hp, Wp, ws, ss)[None, :, None]
    attn = jax.nn.softmax(attn, axis=-1)
    ctx = jnp.einsum("bwhnm,bwhmd->bwhnd", attn, v)
    ctx = ctx.transpose(0, 1, 3, 2, 4).reshape(B, nW, N, C)
    aout = jnp.einsum("bwnc,cd->bwnd", ctx, p["wproj"]) + p["bproj"]

    xs = _window_reverse(aout, ws, Hp, Wp)
    if ss > 0:
        xs = jnp.roll(xs, (ss, ss), axis=(1, 2))
    xs = xs[:, :H, :W, :].reshape(B, L, C)

    h1 = shortcut + xs
    u = _layernorm(h1, p["g2"], p["b2"])
    u = jax.nn.gelu(u @ p["w1"] + p["c1"], approximate=False)
    return h1 + (u @ p["w2"] + p["c2"])


# ----------------------------------------------------------------------------
# Demo
# ----------------------------------------------------------------------------
if __name__ == "__main__":
    B, C = 2, 32
    H = W = 8
    num_heads = 4
    window_size = 4
    shift_size = 2          # exercises the SW-MSA mask path
    mlp_ratio = 4
    L = H * W
    Ch = int(C * mlp_ratio)

    key = jax.random.PRNGKey(0)
    ks = jax.random.split(key, 14)

    def rnd(k, shape, s=0.05):
        return (s * jax.random.normal(k, shape)).astype(jnp.float32)

    params = dict(
        g1=(1.0 + rnd(ks[0], (C,), 0.1)), b1=rnd(ks[1], (C,), 0.1),
        wqkv=rnd(ks[2], (C, 3 * C)), bqkv=rnd(ks[3], (3 * C,)),
        rpb_table=rnd(ks[4], ((2 * window_size - 1) ** 2, num_heads), 0.02),
        wproj=rnd(ks[5], (C, C)), bproj=rnd(ks[6], (C,)),
        g2=(1.0 + rnd(ks[7], (C,), 0.1)), b2=rnd(ks[8], (C,), 0.1),
        w1=rnd(ks[9], (C, Ch)), c1=rnd(ks[10], (Ch,)),
        w2=rnd(ks[11], (Ch, C)), c2=rnd(ks[12], (C,)),
    )
    x = jax.random.normal(ks[13], (B, L, C), dtype=jnp.float32)

    out = swin_block_forward(x, params, (H, W), num_heads, window_size, shift_size)
    out = jax.block_until_ready(out)

    ref = _reference(x, params, (H, W), num_heads, window_size, shift_size)
    assert out.shape == (B, L, C), out.shape
    max_err = float(jnp.max(jnp.abs(out - ref)))
    assert max_err < 1e-3, max_err
    print("KERNEL_OK")
</pallas_src>

<mosaic_0001>
module attributes {stable_mosaic.version = 11 : i64} {
  func.func @_win_attn_kernel(%arg0: i32, %arg1: memref<1x4x16x32xf32, #tpu.memory_space<vmem>>, %arg2: memref<64x1xf32, #tpu.memory_space<vmem>>, %arg3: memref<1x32xf32, #tpu.memory_space<vmem>>, %arg4: memref<1x32xf32, #tpu.memory_space<vmem>>, %arg5: memref<32x96xf32, #tpu.memory_space<vmem>>, %arg6: memref<1x96xf32, #tpu.memory_space<vmem>>, %arg7: memref<4x16x16xf32, #tpu.memory_space<vmem>>, %arg8: memref<4x16x16xf32, #tpu.memory_space<vmem>>, %arg9: memref<32x32xf32, #tpu.memory_space<vmem>>, %arg10: memref<1x32xf32, #tpu.memory_space<vmem>>, %arg11: memref<1x4x16x32xf32, #tpu.memory_space<vmem>>) attributes {dimension_semantics = [#tpu.dimension_semantics<parallel>], iteration_bounds = array<i64: 2>, scalar_prefetch = 0 : i64, scratch_operands = 0 : i64, tpu.core_type = #tpu.core_type<tc>, window_params = [{transform_indices = @transform_0, window_bounds = array<i64: 1, 4, 16, 32>}, {pipeline_mode = #tpu.pipeline_mode<synchronous>, transform_indices = @transform_1, window_bounds = array<i64: 64, 1>}, {pipeline_mode = #tpu.pipeline_mode<synchronous>, transform_indices = @transform_2, window_bounds = array<i64: 1, 32>}, {pipeline_mode = #tpu.pipeline_mode<synchronous>, transform_indices = @transform_3, window_bounds = array<i64: 1, 32>}, {pipeline_mode = #tpu.pipeline_mode<synchronous>, transform_indices = @transform_4, window_bounds = array<i64: 32, 96>}, {pipeline_mode = #tpu.pipeline_mode<synchronous>, transform_indices = @transform_5, window_bounds = array<i64: 1, 96>}, {pipeline_mode = #tpu.pipeline_mode<synchronous>, transform_indices = @transform_6, window_bounds = array<i64: 4, 16, 16>}, {pipeline_mode = #tpu.pipeline_mode<synchronous>, transform_indices = @transform_7, window_bounds = array<i64: 4, 16, 16>}, {pipeline_mode = #tpu.pipeline_mode<synchronous>, transform_indices = @transform_8, window_bounds = array<i64: 32, 32>}, {pipeline_mode = #tpu.pipeline_mode<synchronous>, transform_indices = @transform_9, window_bounds = array<i64: 1, 32>}, {transform_indices = @transform_10, window_bounds = array<i64: 1, 4, 16, 32>}]} {
    %c0 = arith.constant 0 : index
    %c0_0 = arith.constant 0 : index
    %c0_1 = arith.constant 0 : index
    %c0_2 = arith.constant 0 : index
    %0 = vector.load %arg1[%c0, %c0_0, %c0_1, %c0_2] : memref<1x4x16x32xf32, #tpu.memory_space<vmem>>, vector<1x4x16x32xf32>
    %1 = vector.shape_cast %0 : vector<1x4x16x32xf32> to vector<4x16x32xf32>
    %2 = vector.shape_cast %1 : vector<4x16x32xf32> to vector<64x32xf32>
    %cst = arith.constant dense<0.000000e+00> : vector<64xf32>
    %3 = vector.multi_reduction <add>, %2, %cst [1] : vector<64x32xf32> to vector<64xf32>
    %4 = vector.shape_cast %3 : vector<64xf32> to vector<64x1xf32>
    %cst_3 = arith.constant 3.200000e+01 : f32
    %5 = vector.broadcast %cst_3 : f32 to vector<64x1xf32>
    %6 = arith.divf %4, %5 : vector<64x1xf32>
    %7 = vector.broadcast %6 : vector<64x1xf32> to vector<64x32xf32>
    %8 = arith.subf %2, %7 : vector<64x32xf32>
    %9 = arith.mulf %8, %8 : vector<64x32xf32>
    %cst_4 = arith.constant dense<0.000000e+00> : vector<64xf32>
    %10 = vector.multi_reduction <add>, %9, %cst_4 [1] : vector<64x32xf32> to vector<64xf32>
    %11 = vector.shape_cast %10 : vector<64xf32> to vector<64x1xf32>
    %cst_5 = arith.constant 3.200000e+01 : f32
    %12 = vector.broadcast %cst_5 : f32 to vector<64x1xf32>
    %13 = arith.divf %11, %12 : vector<64x1xf32>
    %14 = vector.broadcast %6 : vector<64x1xf32> to vector<64x32xf32>
    %15 = arith.subf %2, %14 : vector<64x32xf32>
    %cst_6 = arith.constant 9.99999974E-6 : f32
    %16 = vector.broadcast %cst_6 : f32 to vector<64x1xf32>
    %17 = arith.addf %13, %16 : vector<64x1xf32>
    %18 = math.rsqrt %17 : vector<64x1xf32>
    %19 = vector.broadcast %18 : vector<64x1xf32> to vector<64x32xf32>
    %20 = arith.mulf %15, %19 : vector<64x32xf32>
    %c0_7 = arith.constant 0 : index
    %c0_8 = arith.constant 0 : index
    %21 = vector.load %arg3[%c0_7, %c0_8] : memref<1x32xf32, #tpu.memory_space<vmem>>, vector<1x32xf32>
    %22 = vector.broadcast %21 : vector<1x32xf32> to vector<64x32xf32>
    %23 = arith.mulf %20, %22 : vector<64x32xf32>
    %c0_9 = arith.constant 0 : index
    %c0_10 = arith.constant 0 : index
    %24 = vector.load %arg4[%c0_9, %c0_10] : memref<1x32xf32, #tpu.memory_space<vmem>>, vector<1x32xf32>
    %25 = vector.broadcast %24 : vector<1x32xf32> to vector<64x32xf32>
    %26 = arith.addf %23, %25 : vector<64x32xf32>
    %c0_11 = arith.constant 0 : index
    %c0_12 = arith.constant 0 : index
    %27 = vector.load %arg2[%c0_11, %c0_12] : memref<64x1xf32, #tpu.memory_space<vmem>>, vector<64x1xf32>
    %28 = vector.broadcast %27 : vector<64x1xf32> to vector<64x32xf32>
    %29 = arith.mulf %26, %28 : vector<64x32xf32>
    %c0_13 = arith.constant 0 : index
    %c0_14 = arith.constant 0 : index
    %30 = vector.load %arg5[%c0_13, %c0_14] : memref<32x96xf32, #tpu.memory_space<vmem>>, vector<32x96xf32>
    %cst_15 = arith.constant dense<0.000000e+00> : vector<64x96xf32>
    %31 = tpu.matmul %29, %30, %cst_15 {dimension_numbers = #tpu.dot_dimension_numbers<[1], [0], [0], [1], [0, 0, 1, 1], [], []>} : vector<64x32xf32>, vector<32x96xf32>, vector<64x96xf32> -> vector<64x96xf32>
    %c0_16 = arith.constant 0 : index
    %c0_17 = arith.constant 0 : index
    %32 = vector.load %arg6[%c0_16, %c0_17] : memref<1x96xf32, #tpu.memory_space<vmem>>, vector<1x96xf32>
    %33 = vector.broadcast %32 : vector<1x96xf32> to vector<64x96xf32>
    %34 = arith.addf %31, %33 : vector<64x96xf32>
    %c0_18 = arith.constant 0 : index
    %c0_19 = arith.constant 0 : index
    %c0_20 = arith.constant 0 : index
    %35 = vector.load %arg8[%c0_18, %c0_19, %c0_20] : memref<4x16x16xf32, #tpu.memory_space<vmem>>, vector<4x16x16xf32>
    %cst_21 = arith.constant 0.000000e+00 : f32
    %36 = vector.broadcast %cst_21 : f32 to vector<64x32xf32>
    %37 = vector.extract_strided_slice %34 {offsets = [0, 0], sizes = [64, 8], strides = [1, 1]} : vector<64x96xf32> to vector<64x8xf32>
    %38 = vector.shape_cast %37 : vector<64x8xf32> to vector<4x16x8xf32>
    %cst_22 = arith.constant 0.353553385 : f32
    %39 = vector.broadcast %cst_22 : f32 to vector<4x16x8xf32>
    %40 = arith.mulf %38, %39 : vector<4x16x8xf32>
    %41 = vector.extract_strided_slice %34 {offsets = [0, 32], sizes = [64, 8], strides = [1, 1]} : vector<64x96xf32> to vector<64x8xf32>
    %42 = vector.shape_cast %41 : vector<64x8xf32> to vector<4x16x8xf32>
    %43 = vector.extract_strided_slice %34 {offsets = [0, 64], sizes = [64, 8], strides = [1, 1]} : vector<64x96xf32> to vector<64x8xf32>
    %44 = vector.shape_cast %43 : vector<64x8xf32> to vector<4x16x8xf32>
    "tpu.trace_start"() <{level = 10 : i32, message = "wnd,wmd->wnm"}> : () -> ()
    %cst_23 = arith.constant dense<0.000000e+00> : vector<4x16x16xf32>
    %45 = tpu.matmul %40, %42, %cst_23 {dimension_numbers = #tpu.dot_dimension_numbers<[2], [2], [1], [1], [0, 0, 0, 1, 1, 1], [0], [0]>} : vector<4x16x8xf32>, vector<4x16x8xf32>, vector<4x16x16xf32> -> vector<4x16x16xf32>
    "tpu.trace_stop"() : () -> ()
    %c0_24 = arith.constant 0 : index
    %c0_25 = arith.constant 0 : index
    %c0_26 = arith.constant 0 : index
    %46 = vector.load %arg7[%c0_24, %c0_25, %c0_26] : memref<4x16x16xf32, #tpu.memory_space<vmem>>, vector<1x16x16xf32>
    %47 = vector.shape_cast %46 : vector<1x16x16xf32> to vector<16x16xf32>
    %48 = vector.shape_cast %47 : vector<16x16xf32> to vector<1x16x16xf32>
    %49 = vector.broadcast %48 : vector<1x16x16xf32> to vector<4x16x16xf32>
    %50 = arith.addf %45, %49 : vector<4x16x16xf32>
    %51 = arith.addf %50, %35 : vector<4x16x16xf32>
    %cst_27 = arith.constant dense<0xFF800000> : vector<4x16xf32>
    %52 = vector.multi_reduction <maximumf>, %51, %cst_27 [2] : vector<4x16x16xf32> to vector<4x16xf32>
    %53 = vector.shape_cast %52 : vector<4x16xf32> to vector<4x16x1xf32>
    %54 = vector.broadcast %53 : vector<4x16x1xf32> to vector<4x16x16xf32>
    %55 = arith.subf %51, %54 : vector<4x16x16xf32>
    %56 = math.exp %55 : vector<4x16x16xf32>
    %cst_28 = arith.constant dense<0.000000e+00> : vector<4x16xf32>
    %57 = vector.multi_reduction <add>, %56, %cst_28 [2] : vector<4x16x16xf32> to vector<4x16xf32>
    %58 = vector.shape_cast %57 : vector<4x16xf32> to vector<4x16x1xf32>
    %59 = vector.broadcast %58 : vector<4x16x1xf32> to vector<4x16x16xf32>
    %60 = arith.divf %56, %59 : vector<4x16x16xf32>
    "tpu.trace_start"() <{level = 10 : i32, message = "wnm,wmd->wnd"}> : () -> ()
    %cst_29 = arith.constant dense<0.000000e+00> : vector<4x16x8xf32>
    %61 = tpu.matmul %60, %44, %cst_29 {dimension_numbers = #tpu.dot_dimension_numbers<[2], [1], [1], [2], [0, 0, 0, 1, 1, 2], [0], [0]>} : vector<4x16x16xf32>, vector<4x16x8xf32>, vector<4x16x8xf32> -> vector<4x16x8xf32>
    "tpu.trace_stop"() : () -> ()
    %62 = vector.shape_cast %61 : vector<4x16x8xf32> to vector<64x8xf32>
    %c0_30 = arith.constant 0 : index
    %c0_31 = arith.constant 0 : index
    %63 = vector.load %arg9[%c0_30, %c0_31] : memref<32x32xf32, #tpu.memory_space<vmem>>, vector<8x32xf32>
    %cst_32 = arith.constant dense<0.000000e+00> : vector<64x32xf32>
    %64 = tpu.matmul %62, %63, %cst_32 {dimension_numbers = #tpu.dot_dimension_numbers<[1], [0], [0], [1], [0, 0, 1, 1], [], []>} : vector<64x8xf32>, vector<8x32xf32>, vector<64x32xf32> -> vector<64x32xf32>
    %65 = arith.addf %36, %64 : vector<64x32xf32>
    %66 = vector.extract_strided_slice %34 {offsets = [0, 8], sizes = [64, 8], strides = [1, 1]} : vector<64x96xf32> to vector<64x8xf32>
    %67 = vector.shape_cast %66 : vector<64x8xf32> to vector<4x16x8xf32>
    %cst_33 = arith.constant 0.353553385 : f32
    %68 = vector.broadcast %cst_33 : f32 to vector<4x16x8xf32>
    %69 = arith.mulf %67, %68 : vector<4x16x8xf32>
    %70 = vector.extract_strided_slice %34 {offsets = [0, 40], sizes = [64, 8], strides = [1, 1]} : vector<64x96xf32> to vector<64x8xf32>
    %71 = vector.shape_cast %70 : vector<64x8xf32> to vector<4x16x8xf32>
    %72 = vector.extract_strided_slice %34 {offsets = [0, 72], sizes = [64, 8], strides = [1, 1]} : vector<64x96xf32> to vector<64x8xf32>
    %73 = vector.shape_cast %72 : vector<64x8xf32> to vector<4x16x8xf32>
    "tpu.trace_start"() <{level = 10 : i32, message = "wnd,wmd->wnm"}> : () -> ()
    %cst_34 = arith.constant dense<0.000000e+00> : vector<4x16x16xf32>
    %74 = tpu.matmul %69, %71, %cst_34 {dimension_numbers = #tpu.dot_dimension_numbers<[2], [2], [1], [1], [0, 0, 0, 1, 1, 1], [0], [0]>} : vector<4x16x8xf32>, vector<4x16x8xf32>, vector<4x16x16xf32> -> vector<4x16x16xf32>
    "tpu.trace_stop"() : () -> ()
    %c1 = arith.constant 1 : index
    %c0_35 = arith.constant 0 : index
    %c0_36 = arith.constant 0 : index
    %75 = vector.load %arg7[%c1, %c0_35, %c0_36] : memref<4x16x16xf32, #tpu.memory_space<vmem>>, vector<1x16x16xf32>
    %76 = vector.shape_cast %75 : vector<1x16x16xf32> to vector<16x16xf32>
    %77 = vector.shape_cast %76 : vector<16x16xf32> to vector<1x16x16xf32>
    %78 = vector.broadcast %77 : vector<1x16x16xf32> to vector<4x16x16xf32>
    %79 = arith.addf %74, %78 : vector<4x16x16xf32>
    %80 = arith.addf %79, %35 : vector<4x16x16xf32>
    %cst_37 = arith.constant dense<0xFF800000> : vector<4x16xf32>
    %81 = vector.multi_reduction <maximumf>, %80, %cst_37 [2] : vector<4x16x16xf32> to vector<4x16xf32>
    %82 = vector.shape_cast %81 : vector<4x16xf32> to vector<4x16x1xf32>
    %83 = vector.broadcast %82 : vector<4x16x1xf32> to vector<4x16x16xf32>
    %84 = arith.subf %80, %83 : vector<4x16x16xf32>
    %85 = math.exp %84 : vector<4x16x16xf32>
    %cst_38 = arith.constant dense<0.000000e+00> : vector<4x16xf32>
    %86 = vector.multi_reduction <add>, %85, %cst_38 [2] : vector<4x16x16xf32> to vector<4x16xf32>
    %87 = vector.shape_cast %86 : vector<4x16xf32> to vector<4x16x1xf32>
    %88 = vector.broadcast %87 : vector<4x16x1xf32> to vector<4x16x16xf32>
    %89 = arith.divf %85, %88 : vector<4x16x16xf32>
    "tpu.trace_start"() <{level = 10 : i32, message = "wnm,wmd->wnd"}> : () -> ()
    %cst_39 = arith.constant dense<0.000000e+00> : vector<4x16x8xf32>
    %90 = tpu.matmul %89, %73, %cst_39 {dimension_numbers = #tpu.dot_dimension_numbers<[2], [1], [1], [2], [0, 0, 0, 1, 1, 2], [0], [0]>} : vector<4x16x16xf32>, vector<4x16x8xf32>, vector<4x16x8xf32> -> vector<4x16x8xf32>
    "tpu.trace_stop"() : () -> ()
    %91 = vector.shape_cast %90 : vector<4x16x8xf32> to vector<64x8xf32>
    %c8 = arith.constant 8 : index
    %c0_40 = arith.constant 0 : index
    %92 = vector.load %arg9[%c8, %c0_40] : memref<32x32xf32, #tpu.memory_space<vmem>>, vector<8x32xf32>
    %cst_41 = arith.constant dense<0.000000e+00> : vector<64x32xf32>
    %93 = tpu.matmul %91, %92, %cst_41 {dimension_numbers = #tpu.dot_dimension_numbers<[1], [0], [0], [1], [0, 0, 1, 1], [], []>} : vector<64x8xf32>, vector<8x32xf32>, vector<64x32xf32> -> vector<64x32xf32>
    %94 = arith.addf %65, %93 : vector<64x32xf32>
    %95 = vector.extract_strided_slice %34 {offsets = [0, 16], sizes = [64, 8], strides = [1, 1]} : vector<64x96xf32> to vector<64x8xf32>
    %96 = vector.shape_cast %95 : vector<64x8xf32> to vector<4x16x8xf32>
    %cst_42 = arith.constant 0.353553385 : f32
    %97 = vector.broadcast %cst_42 : f32 to vector<4x16x8xf32>
    %98 = arith.mulf %96, %97 : vector<4x16x8xf32>
    %99 = vector.extract_strided_slice %34 {offsets = [0, 48], sizes = [64, 8], strides = [1, 1]} : vector<64x96xf32> to vector<64x8xf32>
    %100 = vector.shape_cast %99 : vector<64x8xf32> to vector<4x16x8xf32>
    %101 = vector.extract_strided_slice %34 {offsets = [0, 80], sizes = [64, 8], strides = [1, 1]} : vector<64x96xf32> to vector<64x8xf32>
    %102 = vector.shape_cast %101 : vector<64x8xf32> to vector<4x16x8xf32>
    "tpu.trace_start"() <{level = 10 : i32, message = "wnd,wmd->wnm"}> : () -> ()
    %cst_43 = arith.constant dense<0.000000e+00> : vector<4x16x16xf32>
    %103 = tpu.matmul %98, %100, %cst_43 {dimension_numbers = #tpu.dot_dimension_numbers<[2], [2], [1], [1], [0, 0, 0, 1, 1, 1], [0], [0]>} : vector<4x16x8xf32>, vector<4x16x8xf32>, vector<4x16x16xf32> -> vector<4x16x16xf32>
    "tpu.trace_stop"() : () -> ()
    %c2 = arith.constant 2 : index
    %c0_44 = arith.constant 0 : index
    %c0_45 = arith.constant 0 : index
    %104 = vector.load %arg7[%c2, %c0_44, %c0_45] : memref<4x16x16xf32, #tpu.memory_space<vmem>>, vector<1x16x16xf32>
    %105 = vector.shape_cast %104 : vector<1x16x16xf32> to vector<16x16xf32>
    %106 = vector.shape_cast %105 : vector<16x16xf32> to vector<1x16x16xf32>
    %107 = vector.broadcast %106 : vector<1x16x16xf32> to vector<4x16x16xf32>
    %108 = arith.addf %103, %107 : vector<4x16x16xf32>
    %109 = arith.addf %108, %35 : vector<4x16x16xf32>
    %cst_46 = arith.constant dense<0xFF800000> : vector<4x16xf32>
    %110 = vector.multi_reduction <maximumf>, %109, %cst_46 [2] : vector<4x16x16xf32> to vector<4x16xf32>
    %111 = vector.shape_cast %110 : vector<4x16xf32> to vector<4x16x1xf32>
    %112 = vector.broadcast %111 : vector<4x16x1xf32> to vector<4x16x16xf32>
    %113 = arith.subf %109, %112 : vector<4x16x16xf32>
    %114 = math.exp %113 : vector<4x16x16xf32>
    %cst_47 = arith.constant dense<0.000000e+00> : vector<4x16xf32>
    %115 = vector.multi_reduction <add>, %114, %cst_47 [2] : vector<4x16x16xf32> to vector<4x16xf32>
    %116 = vector.shape_cast %115 : vector<4x16xf32> to vector<4x16x1xf32>
    %117 = vector.broadcast %116 : vector<4x16x1xf32> to vector<4x16x16xf32>
    %118 = arith.divf %114, %117 : vector<4x16x16xf32>
    "tpu.trace_start"() <{level = 10 : i32, message = "wnm,wmd->wnd"}> : () -> ()
    %cst_48 = arith.constant dense<0.000000e+00> : vector<4x16x8xf32>
    %119 = tpu.matmul %118, %102, %cst_48 {dimension_numbers = #tpu.dot_dimension_numbers<[2], [1], [1], [2], [0, 0, 0, 1, 1, 2], [0], [0]>} : vector<4x16x16xf32>, vector<4x16x8xf32>, vector<4x16x8xf32> -> vector<4x16x8xf32>
    "tpu.trace_stop"() : () -> ()
    %120 = vector.shape_cast %119 : vector<4x16x8xf32> to vector<64x8xf32>
    %c16 = arith.constant 16 : index
    %c0_49 = arith.constant 0 : index
    %121 = vector.load %arg9[%c16, %c0_49] : memref<32x32xf32, #tpu.memory_space<vmem>>, vector<8x32xf32>
    %cst_50 = arith.constant dense<0.000000e+00> : vector<64x32xf32>
    %122 = tpu.matmul %120, %121, %cst_50 {dimension_numbers = #tpu.dot_dimension_numbers<[1], [0], [0], [1], [0, 0, 1, 1], [], []>} : vector<64x8xf32>, vector<8x32xf32>, vector<64x32xf32> -> vector<64x32xf32>
    %123 = arith.addf %94, %122 : vector<64x32xf32>
    %124 = vector.extract_strided_slice %34 {offsets = [0, 24], sizes = [64, 8], strides = [1, 1]} : vector<64x96xf32> to vector<64x8xf32>
    %125 = vector.shape_cast %124 : vector<64x8xf32> to vector<4x16x8xf32>
    %cst_51 = arith.constant 0.353553385 : f32
    %126 = vector.broadcast %cst_51 : f32 to vector<4x16x8xf32>
    %127 = arith.mulf %125, %126 : vector<4x16x8xf32>
    %128 = vector.extract_strided_slice %34 {offsets = [0, 56], sizes = [64, 8], strides = [1, 1]} : vector<64x96xf32> to vector<64x8xf32>
    %129 = vector.shape_cast %128 : vector<64x8xf32> to vector<4x16x8xf32>
    %130 = vector.extract_strided_slice %34 {offsets = [0, 88], sizes = [64, 8], strides = [1, 1]} : vector<64x96xf32> to vector<64x8xf32>
    %131 = vector.shape_cast %130 : vector<64x8xf32> to vector<4x16x8xf32>
    "tpu.trace_start"() <{level = 10 : i32, message = "wnd,wmd->wnm"}> : () -> ()
    %cst_52 = arith.constant dense<0.000000e+00> : vector<4x16x16xf32>
    %132 = tpu.matmul %127, %129, %cst_52 {dimension_numbers = #tpu.dot_dimension_numbers<[2], [2], [1], [1], [0, 0, 0, 1, 1, 1], [0], [0]>} : vector<4x16x8xf32>, vector<4x16x8xf32>, vector<4x16x16xf32> -> vector<4x16x16xf32>
    "tpu.trace_stop"() : () -> ()
    %c3 = arith.constant 3 : index
    %c0_53 = arith.constant 0 : index
    %c0_54 = arith.constant 0 : index
    %133 = vector.load %arg7[%c3, %c0_53, %c0_54] : memref<4x16x16xf32, #tpu.memory_space<vmem>>, vector<1x16x16xf32>
    %134 = vector.shape_cast %133 : vector<1x16x16xf32> to vector<16x16xf32>
    %135 = vector.shape_cast %134 : vector<16x16xf32> to vector<1x16x16xf32>
    %136 = vector.broadcast %135 : vector<1x16x16xf32> to vector<4x16x16xf32>
    %137 = arith.addf %132, %136 : vector<4x16x16xf32>
    %138 = arith.addf %137, %35 : vector<4x16x16xf32>
    %cst_55 = arith.constant dense<0xFF800000> : vector<4x16xf32>
    %139 = vector.multi_reduction <maximumf>, %138, %cst_55 [2] : vector<4x16x16xf32> to vector<4x16xf32>
    %140 = vector.shape_cast %139 : vector<4x16xf32> to vector<4x16x1xf32>
    %141 = vector.broadcast %140 : vector<4x16x1xf32> to vector<4x16x16xf32>
    %142 = arith.subf %138, %141 : vector<4x16x16xf32>
    %143 = math.exp %142 : vector<4x16x16xf32>
    %cst_56 = arith.constant dense<0.000000e+00> : vector<4x16xf32>
    %144 = vector.multi_reduction <add>, %143, %cst_56 [2] : vector<4x16x16xf32> to vector<4x16xf32>
    %145 = vector.shape_cast %144 : vector<4x16xf32> to vector<4x16x1xf32>
    %146 = vector.broadcast %145 : vector<4x16x1xf32> to vector<4x16x16xf32>
    %147 = arith.divf %143, %146 : vector<4x16x16xf32>
    "tpu.trace_start"() <{level = 10 : i32, message = "wnm,wmd->wnd"}> : () -> ()
    %cst_57 = arith.constant dense<0.000000e+00> : vector<4x16x8xf32>
    %148 = tpu.matmul %147, %131, %cst_57 {dimension_numbers = #tpu.dot_dimension_numbers<[2], [1], [1], [2], [0, 0, 0, 1, 1, 2], [0], [0]>} : vector<4x16x16xf32>, vector<4x16x8xf32>, vector<4x16x8xf32> -> vector<4x16x8xf32>
    "tpu.trace_stop"() : () -> ()
    %149 = vector.shape_cast %148 : vector<4x16x8xf32> to vector<64x8xf32>
    %c24 = arith.constant 24 : index
    %c0_58 = arith.constant 0 : index
    %150 = vector.load %arg9[%c24, %c0_58] : memref<32x32xf32, #tpu.memory_space<vmem>>, vector<8x32xf32>
    %cst_59 = arith.constant dense<0.000000e+00> : vector<64x32xf32>
    %151 = tpu.matmul %149, %150, %cst_59 {dimension_numbers = #tpu.dot_dimension_numbers<[1], [0], [0], [1], [0, 0, 1, 1], [], []>} : vector<64x8xf32>, vector<8x32xf32>, vector<64x32xf32> -> vector<64x32xf32>
    %152 = arith.addf %123, %151 : vector<64x32xf32>
    %c0_60 = arith.constant 0 : index
    %c0_61 = arith.constant 0 : index
    %153 = vector.load %arg10[%c0_60, %c0_61] : memref<1x32xf32, #tpu.memory_space<vmem>>, vector<1x32xf32>
    %154 = vector.broadcast %153 : vector<1x32xf32> to vector<64x32xf32>
    %155 = arith.addf %152, %154 : vector<64x32xf32>
    %156 = vector.shape_cast %155 : vector<64x32xf32> to vector<4x16x32xf32>
    %c0_62 = arith.constant 0 : index
    %c0_63 = arith.constant 0 : index
    %c0_64 = arith.constant 0 : index
    %c0_65 = arith.constant 0 : index
    %157 = vector.load %arg11[%c0_62, %c0_63, %c0_64, %c0_65] : memref<1x4x16x32xf32, #tpu.memory_space<vmem>>, vector<1x4x16x32xf32>
    %158 = vector.shape_cast %157 : vector<1x4x16x32xf32> to vector<4x16x32xf32>
    %159 = vector.shape_cast %156 : vector<4x16x32xf32> to vector<1x4x16x32xf32>
    tpu.vector_store %arg11[%c0_62, %c0_63, %c0_64, %c0_65], %159 {strides = array<i32>} : memref<1x4x16x32xf32, #tpu.memory_space<vmem>>, vector<1x4x16x32xf32>,
    return
  }
  func.func @transform_0(%arg0: i32) -> (i32, i32, i32, i32) {
    %c0_i32 = arith.constant 0 : i32
    %c0_i32_0 = arith.constant 0 : i32
    %c0_i32_1 = arith.constant 0 : i32
    %c0_i32_2 = arith.constant 0 : i32
    return %arg0, %c0_i32, %c0_i32_0, %c0_i32_1 : i32, i32, i32, i32
  }
  func.func @transform_1(%arg0: i32) -> (i32, i32) {
    %c0_i32 = arith.constant 0 : i32
    %c0_i32_0 = arith.constant 0 : i32
    %c0_i32_1 = arith.constant 0 : i32
    return %c0_i32, %c0_i32_0 : i32, i32
  }
  func.func @transform_2(%arg0: i32) -> (i32, i32) {
    %c0_i32 = arith.constant 0 : i32
    %c0_i32_0 = arith.constant 0 : i32
    %c0_i32_1 = arith.constant 0 : i32
    return %c0_i32, %c0_i32_0 : i32, i32
  }
  func.func @transform_3(%arg0: i32) -> (i32, i32) {
    %c0_i32 = arith.constant 0 : i32
    %c0_i32_0 = arith.constant 0 : i32
    %c0_i32_1 = arith.constant 0 : i32
    return %c0_i32, %c0_i32_0 : i32, i32
  }
  func.func @transform_4(%arg0: i32) -> (i32, i32) {
    %c0_i32 = arith.constant 0 : i32
    %c0_i32_0 = arith.constant 0 : i32
    %c0_i32_1 = arith.constant 0 : i32
    return %c0_i32, %c0_i32_0 : i32, i32
  }
  func.func @transform_5(%arg0: i32) -> (i32, i32) {
    %c0_i32 = arith.constant 0 : i32
    %c0_i32_0 = arith.constant 0 : i32
    %c0_i32_1 = arith.constant 0 : i32
    return %c0_i32, %c0_i32_0 : i32, i32
  }
  func.func @transform_6(%arg0: i32) -> (i32, i32, i32) {
    %c0_i32 = arith.constant 0 : i32
    %c0_i32_0 = arith.constant 0 : i32
    %c0_i32_1 = arith.constant 0 : i32
    %c0_i32_2 = arith.constant 0 : i32
    return %c0_i32, %c0_i32_0, %c0_i32_1 : i32, i32, i32
  }
  func.func @transform_7(%arg0: i32) -> (i32, i32, i32) {
    %c0_i32 = arith.constant 0 : i32
    %c0_i32_0 = arith.constant 0 : i32
    %c0_i32_1 = arith.constant 0 : i32
    %c0_i32_2 = arith.constant 0 : i32
    return %c0_i32, %c0_i32_0, %c0_i32_1 : i32, i32, i32
  }
  func.func @transform_8(%arg0: i32) -> (i32, i32) {
    %c0_i32 = arith.constant 0 : i32
    %c0_i32_0 = arith.constant 0 : i32
    %c0_i32_1 = arith.constant 0 : i32
    return %c0_i32, %c0_i32_0 : i32, i32
  }
  func.func @transform_9(%arg0: i32) -> (i32, i32) {
    %c0_i32 = arith.constant 0 : i32
    %c0_i32_0 = arith.constant 0 : i32
    %c0_i32_1 = arith.constant 0 : i32
    return %c0_i32, %c0_i32_0 : i32, i32
  }
  func.func @transform_10(%arg0: i32) -> (i32, i32, i32, i32) {
    %c0_i32 = arith.constant 0 : i32
    %c0_i32_0 = arith.constant 0 : i32
    %c0_i32_1 = arith.constant 0 : i32
    %c0_i32_2 = arith.constant 0 : i32
    return %arg0, %c0_i32, %c0_i32_0, %c0_i32_1 : i32, i32, i32, i32
  }
}

</mosaic_0001>

<bundles_post_ra>
// kernel: tpu_custom_call.1
= control target key start
LH: loop header
LB: loop body
LE: loop exit
PB: predicated region body
PF: predicated region fallthrough
CT: control target
= control target key end

     0   :  { %s7152_s0 = inlined_call_operand.hbm [shape: f32[2,4,16,32], index: 0, kind: input, shape index: {}]   ;;  %s7153_s1 = inlined_call_operand.vmem [shape: f32[64,1], index: 1, kind: input, shape index: {}]   ;;  %s7154_s2 = inlined_call_operand.vmem [shape: f32[1,32], index: 2, kind: input, shape index: {}]   ;;  %s7155_s3 = inlined_call_operand.vmem [shape: f32[1,32], index: 3, kind: input, shape index: {}]   ;;  %s7156_s4 = inlined_call_operand.hbm [shape: f32[32,96], index: 4, kind: input, shape index: {}]   ;;  %s7157_s5 = inlined_call_operand.vmem [shape: f32[1,96], index: 5, kind: input, shape index: {}]   ;;  %s7158_s6 = inlined_call_operand.vmem [shape: f32[4,16,16], index: 6, kind: input, shape index: {}]   ;;  %s7159_s7 = inlined_call_operand.hbm [shape: f32[4,16,16], index: 7, kind: input, shape index: {}]   ;;  %s7160_s8 = inlined_call_operand.hbm [shape: f32[32,32], index: 8, kind: input, shape index: {}]   ;;  %s7161_s9 = inlined_call_operand.vmem [shape: f32[1,32], index: 9, kind: input, shape index: {}]   ;;  %s7162_s10 = inlined_call_operand.hbm [shape: f32[2,4,16,32], index: 10, kind: output, shape index: {}]  }
   0x1   :  { %7169 = sst [smem:[#allocation17_spill]] %s7161_s9 }
   0x2   :  { %7170 = sst [smem:[#allocation18_spill]] %s7162_s10 }
   0x3   :  { %15 = vsyncpa [#allocation3], 0 }
   0x4   :  { %17 = vsyncpa [#allocation3 + $0x1], 0 }
   0x5   :  { %18 = vsyncpa [#allocation6], 0 }
   0x6   :  { %19 = vsyncpa [#allocation9], 0 }
   0x7   :  { %20 = vsyncpa [#allocation4], 0 }
   0x8   :  { %22 = vsyncpa [#allocation4 + $0x1], 0  ;;  %s6209_s13 = smov 0   ;;  %s6211_s14 = smov 0  }
   0x9   :  { %s6213_s15 = smov 0   ;;  %s6215_s16 = smov 0  }
   0xa LB: > { %7171 = sst [smem:[#allocation15_spill]] %s6119_s13  ;;  %s6230_s17 = sadd.s32 4294967295, %s6131_s16   ;;  %s6131_s16 = sphi %s6215_s16, %s7199_s16   ;;  %s6127_s15 = sphi %s6213_s15, %s7198_s15   ;;  %s6123_s14 = sphi %s6211_s14, %s7197_s14   ;;  %s6119_s13 = sphi %s6209_s13, %s7196_s13  }
   0xb   : > { %s4698_s18 = sadd.s32 4294967294, %s6131_s16   ;;  %p48_p0 = scmp.ne.s32.totalorder %s6123_s14, %s6119_s13 }
   0xc   : > { %p7163_p1 = scmp.eq.s32.totalorder %s6230_s17, 0  ;;  %p267_p3 = scmp.eq.s32.totalorder %s4698_s18, 1 }
   0xd   : > { %p4699_p5 = scmp.ge.s32.totalorder %s6131_s16, 1  ;;  %p274_p7 = scmp.lt.s32.totalorder %s6131_s16, 3 }
   0xe   : > { %p6239_p4 = por %p7163_p1, %p48_p0  ;;  %p6244_p6 = por %p267_p3, %p48_p0 }
   0xf   : > { %p6249_p8 = pnand %p4699_p5, %p274_p7  ;;  %s6133_s22 = smov [#allocation5]  }
  0x10   : > { %s7172_s19 = scalar_select %p6239_p4, 1, 0 }
  0x11   : > { %s7173_s20 = scalar_select %p6244_p6, 1, 0 }
  0x12   : > { %s7175_s21 = scalar_select %p6249_p8, 1, 0 }
  0x13   : > { %7174 = sst [smem:[#allocation16_spill]] %s7173_s20  ;;  %s295_s23 = sshll.u32 %s6133_s22, 4  ;;  %s6253_s23 = int_to_ptr.vmem [resolvable:$true] %s295_s23 }
  0x14   : > { %p5552_p9 = pneg %p6249_p8  ;;  %s6134_s25 = smov [#allocation7]  }
  0x15   : > { %s314_s26 = sshll.u32 %s6134_s25, 4  ;;  %s6135_s27 = smov [#allocation8]   ;;  %s6264_s26 = int_to_ptr.vmem [resolvable:$true] %s314_s26 }
  0x16   : > { %p6260_p11 = pnand %p5552_p9, %p7163_p1  ;;  %s6266_s28 = sshll.u32 %s6135_s27, 4  ;;  %s328_s28 = int_to_ptr.vmem [resolvable:$true] %s6266_s28 }
  0x17   : > { %s5943_s11 = scalar_lea.hbm %s7156_s4, 512 }
  0x18   : > { %p5944_p12 = scmp.ne.s32.totalorder %s7156_s4, %s5943_s11  ;;  %p6276_p13 = pneg %p6260_p11 }
  0x19   : > { %p5950_p5 = scmp.lt.u32.totalorder %s5943_s11, %s7156_s4 }
  0x1a   : > { %p5946_p0 = pnand %p6276_p13, %p5944_p12 }
  0x1c   : > { %p5947_p3 = pneg %p5946_p0 }
  0x1e   : > { %p5952_p7 = pnand %p5950_p5, %p5947_p3 }
  0x20   : > { %5955 = shalt.err (!%p5952_p7)
}
  0x21   : > { %s5956_s29 = scalar_lea.vmem %s6253_s23, 512  ;;  %p5964_p2 = scmp.lt.s32.totalorder %s6253_s23, %s6253_s23 }
  0x22   : > { %p5957_p9 = scmp.ne.s32.totalorder %s6253_s23, %s5956_s29  ;;  %p5965_p6 = scmp.lt.s32.totalorder %s5956_s29, %s5956_s29 }
  0x24   : > { %p5959_p10 = pnand %p5957_p9, %p6276_p13  ;;  %p5966_p12 = por %p5965_p6, %p5964_p2 }
  0x26   : > { %p5960_p1 = pneg %p5959_p10 }
  0x28   : > { %p5967_p0 = pnand %p5966_p12, %p5960_p1 }
  0x2a   : > { %5970 = shalt.err (!%p5967_p0)
}
  0x2b   : > { %s6136_s30 = smov 128   ;;  %s6137_s11 = smov 8  }
  0x2c   : > { %5555 = dma.hbm_to_vmem [thread:$0]  (!%p6260_p11), %s7156_s4, 512, %s6253_s23, [#allocation6], %s6136_s30, %s6136_s30, %s6137_s11  }
  0x2d   : > { %s5971_s29 = scalar_lea.hbm %s7159_s7, 1024 }
  0x2e   : > { %p5972_p1 = scmp.ne.s32.totalorder %s7159_s7, %s5971_s29  ;;  %p5978_p10 = scmp.lt.u32.totalorder %s5971_s29, %s7159_s7 }
  0x30   : > { %p5974_p2 = pnand %p5972_p1, %p6276_p13 }
  0x32   : > { %p5975_p6 = pneg %p5974_p2 }
  0x34   : > { %p5980_p3 = pnand %p5978_p10, %p5975_p6 }
  0x36   : > { %5983 = shalt.err (!%p5980_p3)
}
  0x37   : > { %s5984_s23 = scalar_lea.vmem %s6264_s26, 1024  ;;  %p5992_p12 = scmp.lt.s32.totalorder %s6264_s26, %s6264_s26 }
  0x38   : > { %p5985_p5 = scmp.ne.s32.totalorder %s6264_s26, %s5984_s23  ;;  %p5993_p0 = scmp.lt.s32.totalorder %s5984_s23, %s5984_s23 }
  0x3a   : > { %p5987_p7 = pnand %p5985_p5, %p6276_p13  ;;  %p5994_p1 = por %p5993_p0, %p5992_p12 }
  0x3c   : > { %p5988_p9 = pneg %p5987_p7 }
  0x3e   : > { %p5995_p2 = pnand %p5994_p1, %p5988_p9 }
  0x40   : > { %5998 = shalt.err (!%p5995_p2)
}
  0x41   : > { %5558 = dma.hbm_to_vmem [thread:$0]  (!%p6260_p11), %s7159_s7, 1024, %s6264_s26, [#allocation6], %s6136_s30, %s6136_s30, %s6137_s11  }
  0x42   : > { %s5999_s12 = scalar_lea.hbm %s7160_s8, 512 }
  0x43   : > { %p6000_p6 = scmp.ne.s32.totalorder %s7160_s8, %s5999_s12  ;;  %p6006_p5 = scmp.lt.u32.totalorder %s5999_s12, %s7160_s8 }
  0x45   : > { %p6002_p10 = pnand %p6000_p6, %p6276_p13 }
  0x47   : > { %p6003_p3 = pneg %p6002_p10 }
  0x49   : > { %p6008_p7 = pnand %p6006_p5, %p6003_p3 }
  0x4b   : > { %6011 = shalt.err (!%p6008_p7)
}
  0x4c   : > { %s6012_s23 = scalar_lea.vmem %s328_s28, 512  ;;  %p6020_p1 = scmp.lt.s32.totalorder %s328_s28, %s328_s28 }
  0x4d   : > { %p6013_p9 = scmp.ne.s32.totalorder %s328_s28, %s6012_s23  ;;  %p6021_p2 = scmp.lt.s32.totalorder %s6012_s23, %s6012_s23 }
  0x4f   : > { %p6015_p12 = pnand %p6013_p9, %p6276_p13  ;;  %p6022_p4 = por %p6021_p2, %p6020_p1 }
  0x51   : > { %p6016_p0 = pneg %p6015_p12 }
  0x53   : > { %p6023_p8 = pnand %p6022_p4, %p6016_p0 }
  0x55   : > { %6026 = shalt.err (!%p6023_p8)
}
  0x56   : > { %5561 = dma.hbm_to_vmem [thread:$0]  (!%p6260_p11), %s7160_s8, 512, %s328_s28, [#allocation9], %s6136_s30, %s6136_s30, %s6137_s11  }
  0x57   : > { %s6349_s22 = sadd.s32 1, %s6131_s16   ;;  %s35_s10 = sadd.s32 1, %s6127_s15 }
  0x58   : > { %s32_s24 = ssub.s32 %s6131_s16, %s6349_s22  ;;  %p42_p8 = scmp.ne.s32.totalorder %s6127_s15, %s6123_s14 }
  0x59   : > { %p33_p4 = scmp.eq.s32.totalorder %s32_s24, 0  ;;  %p43_p13 = scmp.eq.s32.totalorder %s6131_s16, 0 }
  0x5a   : > { %p5573_p6 = scmp.lt.s32.totalorder %s6131_s16, 2  ;;  %p7178_p3 = scmp.eq.s32.totalorder %s6230_s17, 1 }
  0x5b   : > { %s6359_s13 = scalar_select %p33_p4, %s6127_s15, %s35_s10  }
  0x5c   : > { %p44_p10 = por %p43_p13, %p42_p8  ;;  %p6363_p5 = por %p7178_p3, %p42_p8 }
  0x5d   : > { %s344_s12 = sand.u32 1, %s6127_s15   ;;  %s4864_s18 = sshll.u32 %s6131_s16, 10 }
  0x5e   : > { %s4704_s28 = sshll.u32 %s344_s12, 6  ;;  %s6372_s29 = scalar_lea.hbm %s7152_s0, %s4864_s18 }
  0x5f   : > { %s348_s23 = scalar_lea.vmem [#allocation2], %s4704_s28  ;;  %p6374_p11 = pnand %p5573_p6, %p44_p10 }
  0x60   : > { %s355_s26 = sshll.u32 %s348_s23, 4  ;;  %s6380_s24 = scalar_lea.sflag [#allocation3], %s344_s12  ;;  %s6378_s26 = int_to_ptr.vmem [resolvable:$true] %s355_s26 }
  0x61   : > { %s6027_s10 = scalar_lea.hbm %s6372_s29, 1024  ;;  %p6029_p9 = pneg %p6374_p11 }
  0x62   : > { %p6028_p7 = scmp.ne.s32.totalorder %s6372_s29, %s6027_s10  ;;  %s6032_s25 = scalar_lea.hbm %s7152_s0, 2048 }
  0x63   : > { %p6033_p1 = scmp.lt.u32.totalorder %s6372_s29, %s7152_s0  ;;  %p6034_p2 = scmp.lt.u32.totalorder %s6032_s25, %s6027_s10 }
  0x64   : > { %p6030_p12 = pnand %p6029_p9, %p6028_p7  ;;  %p6036_p8 = scmp.lt.u32.totalorder %s6027_s10, %s6372_s29 }
  0x65   : > { %p6035_p4 = por %p6034_p2, %p6033_p1 }
  0x66   : > { %p6031_p0 = pneg %p6030_p12 }
  0x67   : > { %p6037_p13 = por %p6036_p8, %p6035_p4 }
  0x69   : > { %p6038_p6 = pnand %p6037_p13, %p6031_p0 }
  0x6b   : > { %6041 = shalt.err (!%p6038_p6)
}
  0x6c   : > { %s6042_s12 = scalar_lea.vmem %s6378_s26, 1024  ;;  %s6138_s18 = smov [#allocation2]  }
  0x6d   : > { %p6043_p10 = scmp.ne.s32.totalorder %s6378_s26, %s6042_s12  ;;  %s6047_s28 = sshll.u32 %s6138_s18, 4  ;;  %s6048_s28 = int_to_ptr.vmem [resolvable:$false] %s6047_s28 }
  0x6e   : > { %s6049_s27 = scalar_lea.vmem %s6048_s28, 2048  ;;  %p6050_p12 = scmp.lt.s32.totalorder %s6378_s26, %s6048_s28 }
  0x6f   : > { %p6045_p3 = pnand %p6043_p10, %p6029_p9  ;;  %p6051_p1 = scmp.lt.s32.totalorder %s6049_s27, %s6042_s12 }
  0x71   : > { %p6046_p7 = pneg %p6045_p3  ;;  %p6052_p2 = por %p6051_p1, %p6050_p12 }
  0x73   : > { %p6053_p4 = pnand %p6052_p2, %p6046_p7 }
  0x75   : > { %6056 = shalt.err (!%p6053_p4)
}
  0x76   : > { %5565 = dma.hbm_to_vmem [thread:$0]  (!%p6374_p11), %s6372_s29, 1024, %s6378_s26, %s6380_s24, %s6136_s30, %s6136_s30, %s6137_s11  }
  0x77   : > { %p7181_p9 = scmp.ne.s32.totalorder %s7175_s21, 0 }
  0x78   : > { %s6414_s10 = sand.u32 (!%p7181_p9), 1, %s6123_s14   ;;  %p7182_p0 = scmp.ne.s32.totalorder (!%p7181_p9), %s7172_s19, 0 }
  0x79   : > { %367 = sbr.rel (%p7181_p9) target bundleno = 4000 (0xfa0), region = 60  ;;  %s4708_s25 = sshll.u32 (!%p7181_p9), %s6414_s10, 6 }
  0x7a   : > { %s370_s23 = scalar_lea.sflag (!%p7181_p9), [#allocation3], %s6414_s10  ;;  %s373_s9 = scalar_lea.vmem (!%p7181_p9), [#allocation2], %s4708_s25 }
  0x80   : > { %6102 = dma.done.wait (%p7182_p0), %s370_s23, 1024  }
  0x81   : > { %6104 = vsyncadd (%p7182_p0), %s370_s23, 4294966272  ;;  %p7183_p11 = scmp.eq.s32.totalorder %s6230_s17, 0 }
  0x83   : > { %6106 = dma.done.wait (%p7183_p11), [#allocation6], 1536   ;;  %p7184_p8 = pmov %p7183_p11 }
  0x85   : > { %6108 = vsyncadd (%p7184_p8), [#allocation6], 4294965760  ;;  %p7185_p13 = pmov %p7184_p8 }
  0x86   : > { %p7186_p6 = pmov %p7184_p8 }
  0x87   : > { %6110 = dma.done.wait (%p7185_p13), [#allocation9], 512  }
  0x88   : > { %6112 = vsyncadd (%p7186_p6), [#allocation9], 4294966784  ;;  %vm430_vm0 = vcmask 261120   ;;  %v422_v0 = vld [vmem:[%s373_s9] sm:$0xff]  ;;  %v424_v1 = vld [vmem:[%s373_s9 + $0x10] sm:$0xff]  ;;  %v6139_v16 = vmov 0  }
  0x89   : > { %v423_v2 = vld [vmem:[%s373_s9 + $0x8] sm:$0xff]  ;;  %v431_v3 = vsel %vm430_vm0, %v422_v0, 0.0  ;;  %v437_v4 = vsel %vm430_vm0, %v424_v1, 0.0  ;;  %v425_v5 = vld [vmem:[%s373_s9 + $0x18] sm:$0xff]  ;;  %v426_v8 = vld [vmem:[%s373_s9 + $0x20] sm:$0xff]  ;;  %5630 = vset.pattern.permute.xlu1 %v6139_v16  ;;  %5629 = vset.pattern.permute.xlu0 %v6139_v16  ;;  %vm786_vm1 = vcmask 64512  }
  0x8a   : > { %432 = vadd.xlane.f32.xlu0 %v431_v3  ;;  %438 = vadd.xlane.f32.xlu1 %v437_v4  ;;  %v434_v6 = vsel %vm430_vm0, %v423_v2, 0.0  ;;  %v440_v7 = vsel %vm430_vm0, %v425_v5, 0.0  ;;  %v427_v9 = vld [vmem:[%s373_s9 + $0x28] sm:$0xff]  ;;  %v443_v10 = vsel %vm430_vm0, %v426_v8, 0.0  ;;  %v428_v12 = vld [vmem:[%s373_s9 + $0x30] sm:$0xff]  ;;  %v6438_v13 = vld [vmem:[%s373_s9 + $0x38] sm:$0xff] }
  0x8b   : > { %v446_v11 = vsel %vm430_vm0, %v427_v9, 0.0  ;;  %v449_v14 = vsel %vm430_vm0, %v428_v12, 0.0  ;;  %v452_v15 = vsel %vm430_vm0, %v6438_v13, 0.0  ;;  %v567_v52 = vld [vmem:[%s7153_s1 + $0x8] sm:$0xff]  ;;  %v568_v53 = vld [vmem:[%s7153_s1 + $0x10] sm:$0xff]  ;;  %v566_v54 = vld [vmem:[%s7153_s1] sm:$0xff] }
  0x8c   : > { %v622_v55 = vld [vmem:[#allocation5] sm:$0xff]  ;;  %v623_v56 = vld [vmem:[#allocation5 + $0x8] sm:$0xff]  ;;  %v569_v58 = vld [vmem:[%s7153_s1 + $0x18] sm:$0xff]  ;;  %s6140_s28 = smov 96   ;;  %s6141_s27 = smov 64   ;;  %vm1153_vm3 = vcmask 130048  }
  0x8d   : > { %v5342_v57 = vpack.c.bf16 %v623_v56, %v622_v55  ;;  %v624_v59 = vld [vmem:[#allocation5 + $0x10] sm:$0xff]  ;;  %v625_v60 = vld [vmem:[#allocation5 + $0x18] sm:$0xff]  ;;  %v570_v62 = vld [vmem:[%s7153_s1 + $0x20] sm:$0xff]  ;;  %s6142_s23 = smov 88   ;;  %s6143_s11 = smov 120  }
  0x8e   : > { %435 = vadd.xlane.f32.xlu0 %v434_v6  ;;  %441 = vadd.xlane.f32.xlu1 %v440_v7  ;;  %v5346_v61 = vpack.c.bf16 %v625_v60, %v624_v59  ;;  %v571_v63 = vld [vmem:[%s7153_s1 + $0x28] sm:$0xff]  ;;  %v573_v6 = vld [vmem:[%s7153_s1 + $0x38] sm:$0xff]  ;;  %vm6561_vm2 = vmpackc.low %vm786_vm1, %vm786_vm1  ;;  %s6144_s18 = smov 56   ;;  %s6147_s30 = smov 48  }
  0x8f   : > { %5343 = vmatprep.subr.bf16.mxu0 %v5342_v57  ;;  %s6149_s29 = smov 104   ;;  %s7189_s9 = sld [smem:[#allocation17_spill]] }
  0x90   : > { %5345 = vmatpush3.bf16.msra.mxu0 %v5342_v57  ;;  %s421_s19 = scalar_lea.vmem [#allocation10], %s4708_s25  ;;  %s4865_s25 = sshll.u32 %s6230_s17, 10 }
  0x91   : > { %5347 = vmatprep.subr.bf16.mxu0 %v5346_v61  ;;  %s4596_s21 = sshll.u32 %s421_s19, 4  ;;  %s4583_s17 = scalar_lea.sflag [#allocation4], %s6414_s10  ;;  %s7106_s21 = int_to_ptr.vmem [resolvable:$true] %s4596_s21 }
  0x92   : > { %444 = vadd.xlane.f32.xlu0 %v443_v10  ;;  %447 = vadd.xlane.f32.xlu1 %v446_v11  ;;  %s6057_s24 = scalar_lea.vmem %s7106_s21, 1024  ;;  %s6151_s12 = smov [#allocation10]  }
  0x93   : > { %p6058_p10 = scmp.ne.s32.totalorder %s7106_s21, %s6057_s24 }
  0x94   : > { %5349 = vmatpush3.bf16.msra.mxu0 %v5346_v61 }
  0x95   : > { %p6059_p3 = pnand %p6058_p10, %p6363_p5 }
  0x96   : > { %450 = vadd.xlane.f32.xlu0 %v449_v14  ;;  %453 = vadd.xlane.f32.xlu1 %v452_v15 }
  0x97   : > { %p6060_p7 = pneg %p6059_p3 }
 0x117   : > { %v433_v17 = vpop.xlane.xlu0 %432  ;;  %v439_v18 = vpop.xlane.xlu1 %438 }
 0x118   : > { %v456_v19 = vmul.f32 0.03125, %v433_v17  ;;  %v458_v20 = vmul.f32 0.03125, %v439_v18 }
 0x11a   : > { %v6443_v21 = vsub.f32 %v422_v0, %v456_v19  ;;  %v6445_v22 = vsub.f32 %v424_v1, %v458_v20  ;;  %v572_v0 = vld [vmem:[%s7153_s1 + $0x30] sm:$0xff] }
 0x11b   : > { %v436_v23 = vpop.xlane.xlu0 %435  ;;  %v442_v24 = vpop.xlane.xlu1 %441 }
 0x11c   : > { %v457_v25 = vmul.f32 0.03125, %v436_v23  ;;  %v459_v26 = vmul.f32 0.03125, %v442_v24  ;;  %v472_v27 = vmul.f32 %v6443_v21, %v6443_v21  ;;  %v474_v28 = vmul.f32 %v6445_v22, %v6445_v22 }
 0x11e   : > { %v6451_v29 = vsub.f32 %v423_v2, %v457_v25  ;;  %v6453_v30 = vsub.f32 %v425_v5, %v459_v26  ;;  %v480_v31 = vsel %vm430_vm0, %v472_v27, 0.0  ;;  %v486_v34 = vsel %vm430_vm0, %v474_v28, 0.0 }
 0x11f   : > { %481 = vadd.xlane.f32.xlu0 %v480_v31  ;;  %v445_v32 = vpop.xlane.xlu0 %444  ;;  %v448_v33 = vpop.xlane.xlu1 %447 }
 0x120   : > { %v460_v35 = vmul.f32 0.03125, %v445_v32  ;;  %v461_v36 = vmul.f32 0.03125, %v448_v33  ;;  %v473_v37 = vmul.f32 %v6451_v29, %v6451_v29  ;;  %v475_v38 = vmul.f32 %v6453_v30, %v6453_v30  ;;  %v4713_v33 = vld [vmem:[%s7154_s2] ss:$0 sm:$0xff] }
 0x122   : > { %v6461_v39 = vsub.f32 %v426_v8, %v460_v35  ;;  %v6463_v40 = vsub.f32 %v427_v9, %v461_v36  ;;  %v483_v41 = vsel %vm430_vm0, %v473_v37, 0.0  ;;  %v489_v44 = vsel %vm430_vm0, %v475_v38, 0.0  ;;  %v4714_v36 = vld [vmem:[%s7155_s3] ss:$0 sm:$0xff] }
 0x123   : > { %487 = vadd.xlane.f32.xlu0 %v486_v34  ;;  %484 = vadd.xlane.f32.xlu1 %v483_v41  ;;  %v451_v42 = vpop.xlane.xlu0 %450  ;;  %v454_v1 = vpop.xlane.xlu1 %453 }
 0x124   : > { %v462_v43 = vmul.f32 0.03125, %v451_v42  ;;  %v476_v45 = vmul.f32 %v6461_v39, %v6461_v39  ;;  %v477_v46 = vmul.f32 %v6463_v40, %v6463_v40  ;;  %v463_v2 = vmul.f32 0.03125, %v454_v1 }
 0x126   : > { %v6471_v47 = vsub.f32 %v428_v12, %v462_v43  ;;  %v492_v48 = vsel %vm430_vm0, %v476_v45, 0.0  ;;  %v495_v49 = vsel %vm430_vm0, %v477_v46, 0.0  ;;  %v6500_v3 = vsub.f32 %v6438_v13, %v463_v2 }
 0x127   : > { %490 = vadd.xlane.f32.xlu1 %v489_v44  ;;  %493 = vadd.xlane.f32.xlu0 %v492_v48 }
 0x128   : > { %v478_v50 = vmul.f32 %v6471_v47, %v6471_v47  ;;  %v479_v4 = vmul.f32 %v6500_v3, %v6500_v3 }
 0x12a   : > { %v498_v51 = vsel %vm430_vm0, %v478_v50, 0.0  ;;  %v501_v5 = vsel %vm430_vm0, %v479_v4, 0.0 }
 0x12b   : > { %496 = vadd.xlane.f32.xlu1 %v495_v49  ;;  %499 = vadd.xlane.f32.xlu0 %v498_v51 }
 0x13c   : > { %581 = vperm.xlu1 %5630, %v567_v52  }
 0x140   : > { %586 = vperm.xlu1 %5630, %v568_v53  }
 0x141   : > { %576 = vperm.xlu0 %5629, %v566_v54  }
 0x144   : > { %591 = vperm.xlu1 %5630, %v569_v58  }
 0x148   : > { %596 = vperm.xlu1 %5630, %v570_v62  }
 0x14c   : > { %601 = vperm.xlu1 %5630, %v571_v63  }
 0x150   : > { %606 = vperm.xlu1 %5630, %v572_v0  }
 0x174   : > { %502 = vadd.xlane.f32.xlu1 %v501_v5 }
 0x185   : > { %611 = vperm.xlu1 %5630, %v573_v6  }
 0x1ac   : > { %v482_v7 = vpop.xlane.xlu0 %481 }
 0x1ad   : > { %v504_v8 = vmul.f32 0.03125, %v482_v7 }
 0x1af   : > { %v512_v9 = vadd.f32 1e-05, %v504_v8 }
 0x1b0   : > { %v485_v10 = vpop.xlane.xlu1 %484  ;;  %v488_v11 = vpop.xlane.xlu0 %487 }
 0x1b1   : > { %5791 = vrsqrt.f32 %v512_v9  ;;  %v505_v12 = vmul.f32 0.03125, %v485_v10  ;;  %v506_v13 = vmul.f32 0.03125, %v488_v11 }
 0x1b3   : > { %v513_v14 = vadd.f32 1e-05, %v505_v12  ;;  %v514_v15 = vadd.f32 1e-05, %v506_v13 }
 0x1b4   : > { %v491_v16 = vpop.xlane.xlu1 %490  ;;  %v494_v17 = vpop.xlane.xlu0 %493 }
 0x1b5   : > { %5793 = vrsqrt.f32 %v513_v14  ;;  %v507_v18 = vmul.f32 0.03125, %v491_v16  ;;  %v508_v19 = vmul.f32 0.03125, %v494_v17 }
 0x1b6   : > { %5795 = vrsqrt.f32 %v514_v15 }
 0x1b7   : > { %v515_v20 = vadd.f32 1e-05, %v507_v18  ;;  %v516_v23 = vadd.f32 1e-05, %v508_v19  ;;  %v4715_v18 = vld [vmem:[%s7157_s5] ss:$0 sm:$0xff] }
 0x1b8   : > { %v497_v24 = vpop.xlane.xlu1 %496  ;;  %v500_v25 = vpop.xlane.xlu0 %499 }
 0x1b9   : > { %5797 = vrsqrt.f32 %v515_v20  ;;  %v509_v26 = vmul.f32 0.03125, %v497_v24  ;;  %v510_v27 = vmul.f32 0.03125, %v500_v25 }
 0x1ba   : > { %5799 = vrsqrt.f32 %v516_v23 }
 0x1bb   : > { %v5792_v28 = vpop.eup %5791  ;;  %v517_v31 = vadd.f32 1e-05, %v509_v26  ;;  %v518_v32 = vadd.f32 1e-05, %v510_v27 }
 0x1bc   : > { %v582_v34 = vpop.permute.xlu1 %581  ;;  %v528_v35 = vmul.f32 %v5792_v28, %v6443_v21 }
 0x1bd   : > { %5801 = vrsqrt.f32 %v517_v31 }
 0x1be   : > { %5803 = vrsqrt.f32 %v518_v32  ;;  %v543_v37 = vmul.f32 %v4713_v33, %v528_v35 }
 0x1bf   : > { %v5794_v38 = vpop.eup %5793 }
 0x1c0   : > { %v5796_v41 = vpop.eup %5795  ;;  %v529_v42 = vmul.f32 %v5794_v38, %v6451_v29  ;;  %v587_v43 = vpop.permute.xlu1 %586  ;;  %v558_v45 = vadd.f32 %v4714_v36, %v543_v37 }
 0x1c1   : > { %v577_v44 = vpop.permute.xlu0 %576  ;;  %v530_v46 = vmul.f32 %v5796_v41, %v6445_v22 }
 0x1c2   : > { %v544_v48 = vmul.f32 %v4713_v33, %v529_v42  ;;  %v614_v49 = vmul.f32 %v577_v44, %v558_v45 }
 0x1c3   : > { %v5798_v50 = vpop.eup %5797  ;;  %v545_v21 = vmul.f32 %v4713_v33, %v530_v46 }
 0x1c4   : > { %v5800_v51 = vpop.eup %5799  ;;  %v559_v52 = vadd.f32 %v4714_v36, %v544_v48  ;;  %v531_v53 = vmul.f32 %v5798_v50, %v6453_v30  ;;  %v592_v54 = vpop.permute.xlu1 %591  ;;  %5050 = vmatprep.mubr.msk.f32.mxu0 %vm430_vm0, %v614_v49  ;;  %v4825_v50 = vld [vmem:[%s7158_s6 + $0x38] sm:$0xff] }
 0x1c5   : > { %v560_v55 = vadd.f32 %v4714_v36, %v545_v21  ;;  %v532_v56 = vmul.f32 %v5800_v51, %v6461_v39 }
 0x1c6   : > { %v615_v29 = vmul.f32 %v582_v34, %v559_v52  ;;  %v546_v57 = vmul.f32 %v4713_v33, %v531_v53 }
 0x1c7   : > { %v5802_v58 = vpop.eup %5801  ;;  %v616_v59 = vmul.f32 %v587_v43, %v560_v55  ;;  %v547_v60 = vmul.f32 %v4713_v33, %v532_v56 }
 0x1c8   : > { %v5804_v22 = vpop.eup %5803  ;;  %v561_v61 = vadd.f32 %v4714_v36, %v546_v57  ;;  %v597_v62 = vpop.permute.xlu1 %596  ;;  %5051 = vmatmul.mubr.msk.f32.vlgmr.msra.gmra.mrb[0].mxu0 %vm430_vm0, %v615_v29  ;;  %v533_v63 = vmul.f32 %v5802_v58, %v6463_v40 }
 0x1c9   : > { %v562_v0 = vadd.f32 %v4714_v36, %v547_v60  ;;  %5053 = vmatprep.mubr.msk.f32.mxu0 %vm430_vm0, %v616_v59  ;;  %v534_v30 = vmul.f32 %v5804_v22, %v6471_v47 }
 0x1ca   : > { %v617_v1 = vmul.f32 %v592_v54, %v561_v61  ;;  %v548_v2 = vmul.f32 %v4713_v33, %v533_v63 }
 0x1cb   : > { %v618_v39 = vmul.f32 %v597_v62, %v562_v0  ;;  %v549_v4 = vmul.f32 %v4713_v33, %v534_v30 }
 0x1cc   : > { %v563_v5 = vadd.f32 %v4714_v36, %v548_v2  ;;  %v602_v6 = vpop.permute.xlu1 %601  ;;  %5054 = vmatmul.mubr.msk.f32.gmra.mrb[2].mxu0 %vm430_vm0, %v617_v1 }
 0x1cd   : > { %5056 = vmatprep.mubr.msk.f32.mxu0 %vm430_vm0, %v618_v39  ;;  %v564_v8 = vadd.f32 %v4714_v36, %v549_v4 }
 0x1ce   : > { %v619_v7 = vmul.f32 %v602_v6, %v563_v5 }
 0x1d0   : > { %v607_v9 = vpop.permute.xlu1 %606  ;;  %5057 = vmatmul.mubr.msk.f32.gmra.mrb[4].mxu0 %vm430_vm0, %v619_v7 }
 0x1d1   : > { %v620_v40 = vmul.f32 %v607_v9, %v564_v8 }
 0x1d3   : > { %5059 = vmatprep.mubr.msk.f32.mxu0 %vm430_vm0, %v620_v40 }
 0x201   : > { %v503_v10 = vpop.xlane.xlu1 %502 }
 0x202   : > { %v511_v47 = vmul.f32 0.03125, %v503_v10 }
 0x204   : > { %v519_v11 = vadd.f32 1e-05, %v511_v47 }
 0x205   : > { %v612_v16 = vpop.permute.xlu1 %611 }
 0x206   : > { %5805 = vrsqrt.f32 %v519_v11 }
 0x210   : > { %v5806_v12 = vpop.eup %5805 }
 0x211   : > { %v535_v13 = vmul.f32 %v5806_v12, %v6500_v3 }
 0x213   : > { %v550_v14 = vmul.f32 %v4713_v33, %v535_v13 }
 0x215   : > { %v565_v15 = vadd.f32 %v4714_v36, %v550_v14 }
 0x217   : > { %v621_v17 = vmul.f32 %v612_v16, %v565_v15  ;;  %v779_v16 = vld [vmem:[%s7158_s6 + $0x8] sm:$0xff] }
 0x219   : > { %5060 = vmatmul.mubr.msk.f32.gmra.mrb[6].mxu0 %vm430_vm0, %v621_v17  ;;  %v778_v17 = vld [vmem:[%s7158_s6] sm:$0xff] }
 0x29b   : > { %v5052_v19 = vpop.f32.mrb[0].mxu0 }
 0x29c   : > { %v729_v20 = vadd.f32 %v5052_v19, %v4715_v18  ;;  %v723_v23 = vpop.f32.mrb[1].mxu0  ;;  %v6617_v19 = vld [vmem:[#allocation7 + $0x8] sm:$0xff] }
 0x29d   : > { %v724_v24 = vadd.f32 %v4715_v18, %v723_v23 }
 0x29e   : > { %v6571_v58 = vmul.f32 0.35355338, %v729_v20 }
 0x29f   : > { %v5055_v25 = vpop.f32.mrb[2].mxu0  ;;  %v6533_v26 = vpack.i.bf16 %v729_v20, %v724_v24  ;;  %v6535_v27 = vmul.f32 0.35355338, %v724_v24  ;;  %v6619_v24 = vld [vmem:[#allocation7] sm:$0xff] }
 0x2a0   : > { %v739_v3 = vadd.f32 %v5055_v25, %v4715_v18  ;;  %v733_v28 = vpop.f32.mrb[3].mxu0 }
 0x2a1   : > { %v734_v31 = vadd.f32 %v4715_v18, %v733_v28  ;;  %5632 = vrot.lane.b32.xlu1 %v6533_v26, %s6140_s28  ;;  %5066 = vmatprep.mubr.msk.f32.mxu1 %vm786_vm1, %v6535_v27 }
 0x2a2   : > { %v6585_v60 = vmul.f32 0.35355338, %v739_v3 }
 0x2a3   : > { %v5058_v32 = vpop.f32.mrb[4].mxu0  ;;  %v6540_v33 = vpack.i.bf16 %v739_v3, %v734_v31  ;;  %v6573_v59 = vmul.f32 0.35355338, %v734_v31 }
 0x2a4   : > { %v749_v34 = vadd.f32 %v5058_v32, %v4715_v18  ;;  %v743_v35 = vpop.f32.mrb[5].mxu0 }
 0x2a5   : > { %v744_v36 = vadd.f32 %v4715_v18, %v743_v35  ;;  %5637 = vrot.lane.b32.xlu0 %v6540_v33, %s6140_s28  ;;  %v6625_v35 = vld [vmem:[#allocation7 + $0x18] sm:$0xff] }
 0x2a6   : > { %v6587_v22 = vmul.f32 0.35355338, %v749_v34 }
 0x2a7   : > { %v6543_v37 = vmul.f32 0.35355338, %v744_v36  ;;  %v6545_v38 = vpack.i.bf16 %v749_v34, %v744_v36 }
 0x2a9   : > { %5080 = vmatprep.mubr.msk.f32.mxu0 %vm786_vm1, %v6543_v37  ;;  %5642 = vrot.lane.b32.xlu1 %v6545_v38, %s6140_s28 }
 0x2ad   : > { %5657 = vrot.lane.b32.xlu1 %v6540_v33, %s6141_s27 }
 0x2b1   : > { %5662 = vrot.lane.b32.xlu1 %v6545_v38, %s6141_s27 }
 0x2b5   : > { %5667 = vrot.lane.b32.xlu1 %v6533_v26, %s6142_s23 }
 0x2ec   : > { %v5061_v41 = vpop.f32.mrb[6].mxu0 }
 0x2ed   : > { %v759_v42 = vadd.f32 %v5061_v41, %v4715_v18  ;;  %v753_v43 = vpop.f32.mrb[7].mxu0 }
 0x2ee   : > { %v754_v44 = vadd.f32 %v4715_v18, %v753_v43  ;;  %v6627_v43 = vld [vmem:[#allocation7 + $0x10] sm:$0xff] }
 0x2ef   : > { %v6604_v14 = vmul.f32 0.35355338, %v759_v42 }
 0x2f0   : > { %v6554_v45 = vpack.i.bf16 %v759_v42, %v754_v44  ;;  %v6589_v61 = vmul.f32 0.35355338, %v754_v44 }
 0x2f2   : > { %5647 = vrot.lane.b32.xlu0 %v6554_v45, %s6140_s28  ;;  %s6145_s28 = smov 80  }
 0x2f6   : > { %5652 = vrot.lane.b32.xlu0 %v6533_v26, %s6141_s27 }
 0x2fa   : > { %5672 = vrot.lane.b32.xlu0 %v6554_v45, %s6141_s27  ;;  %s6146_s27 = smov 112  }
 0x313   : > { %v5633_v46 = vpop.permute.xlu1 %5632 }
 0x314   : > { %v5635_v48 = vunpack.i.h.bf16 %v5633_v46  ;;  %v5634_v49 = vunpack.i.l.bf16 %v5633_v46 }
 0x316   : > { %v5350_v21 = vpack.c.bf16 %v5635_v48, %v5634_v49  ;;  %v6629_v49 = vld [vmem:[#allocation7 + $0x28] sm:$0xff] }
 0x317   : > { %v5638_v51 = vpop.permute.xlu0 %5637 }
 0x318   : > { %v5640_v52 = vunpack.i.h.bf16 %v5638_v51  ;;  %v5639_v53 = vunpack.i.l.bf16 %v5638_v51  ;;  %5352 = vmatprep.subr.msk.bf16.mxu1 %vm6561_vm2, %v5350_v21 }
 0x319   : > { %5355 = vmatpush3.bf16.xpose.msk.msra.mxu1 %vm6561_vm2, %v5350_v21 }
 0x31a   : > { %v5356_v54 = vpack.c.bf16 %v5640_v52, %v5639_v53  ;;  %v6632_v52 = vld [vmem:[#allocation7 + $0x20] sm:$0xff] }
 0x31b   : > { %v5643_v55 = vpop.permute.xlu1 %5642 }
 0x31c   : > { %v5645_v56 = vunpack.i.h.bf16 %v5643_v55  ;;  %v5644_v29 = vunpack.i.l.bf16 %v5643_v55  ;;  %5358 = vmatprep.subr.msk.bf16.mxu1 %vm6561_vm2, %v5356_v54 }
 0x31e   : > { %v5362_v57 = vpack.c.bf16 %v5645_v56, %v5644_v29 }
 0x31f   : > { %v5658_v62 = vpop.permute.xlu1 %5657 }
 0x320   : > { %5067 = vmatmul.mubr.msk.f32.vlgmr.msra.gmra.mrb[0].mxu1 %vm786_vm1, %v6571_v58  ;;  %5364 = vmatprep.subr.msk.bf16.mxu0 %vm6561_vm2, %v5362_v57  ;;  %v5660_v63 = vunpack.i.h.bf16 %v5658_v62  ;;  %v5659_v0 = vunpack.i.l.bf16 %v5658_v62 }
 0x321   : > { %5361 = vmatpush3.bf16.xpose.msk.msra.mxu1 %vm6561_vm2, %v5356_v54  ;;  %5073 = vmatprep.mubr.msk.f32.mxu1 %vm786_vm1, %v6573_v59 }
 0x322   : > { %5367 = vmatpush3.bf16.xpose.msk.msra.mxu0 %vm6561_vm2, %v5362_v57  ;;  %v5378_v6 = vpack.c.bf16 %v5660_v63, %v5659_v0  ;;  %v6641_v0 = vld [vmem:[#allocation7 + $0x38] sm:$0xff] }
 0x323   : > { %v5663_v39 = vpop.permute.xlu1 %5662 }
 0x324   : > { %v5665_v7 = vunpack.i.h.bf16 %v5663_v39  ;;  %v5664_v8 = vunpack.i.l.bf16 %v5663_v39 }
 0x326   : > { %v6601_v13 = vpack.c.bf16 %v5665_v7, %v5664_v8 }
 0x327   : > { %v6653_v8 = vpop.permute.xlu1 %5667 }
 0x328   : > { %5074 = vmatmul.mubr.msk.f32.vlgmr.msra.gmra.mrb[2].mxu1 %vm786_vm1, %v6585_v60 }
 0x329   : > { %5081 = vmatmul.mubr.msk.f32.vlgmr.msra.gmra.mrb[8].mxu0 %vm786_vm1, %v6587_v22  ;;  %5087 = vmatprep.mubr.msk.f32.mxu1 %vm786_vm1, %v6589_v61 }
 0x364   : > { %v5648_v30 = vpop.permute.xlu0 %5647 }
 0x365   : > { %v5650_v1 = vunpack.i.h.bf16 %v5648_v30  ;;  %v5649_v2 = vunpack.i.l.bf16 %v5648_v30 }
 0x367   : > { %v5368_v4 = vpack.c.bf16 %v5650_v1, %v5649_v2  ;;  %v6643_v2 = vld [vmem:[#allocation7 + $0x30] sm:$0xff] }
 0x368   : > { %v5653_v5 = vpop.permute.xlu0 %5652 }
 0x369   : > { %v5655_v9 = vunpack.i.h.bf16 %v5653_v5  ;;  %v5654_v40 = vunpack.i.l.bf16 %v5653_v5  ;;  %5370 = vmatprep.subr.msk.bf16.mxu1 %vm6561_vm2, %v5368_v4 }
 0x36a   : > { %5373 = vmatpush3.bf16.xpose.msk.msra.mxu1 %vm6561_vm2, %v5368_v4 }
 0x36b   : > { %5379 = vmatprep.subr.bf16.mxu1 %v5378_v6  ;;  %v5374_v10 = vpack.c.bf16 %v5655_v9, %v5654_v40 }
 0x36c   : > { %v5673_v47 = vpop.permute.xlu0 %5672 }
 0x36d   : > { %v5675_v11 = vunpack.i.h.bf16 %v5673_v47  ;;  %v5674_v12 = vunpack.i.l.bf16 %v5673_v47  ;;  %5375 = vmatprep.subr.bf16.mxu0 %v5374_v10 }
 0x36e   : > { %5377 = vmatpush3.bf16.msra.mxu0 %v5374_v10 }
 0x36f   : > { %5383 = vmatprep.subr.bf16.mxu0 %v6601_v13  ;;  %v6608_v15 = vpack.c.bf16 %v5675_v11, %v5674_v12 }
 0x371   : > { %5088 = vmatmul.mubr.msk.f32.vlgmr.msra.gmra.mrb[4].mxu1 %vm786_vm1, %v6604_v14 }
 0x372   : > { %5381 = vmatpush3.bf16.msra.mxu1 %v5378_v6 }
 0x373   : > { %5387 = vmatprep.subr.bf16.mxu1 %v6608_v15 }
 0x3f3   : > { %v5068_v18 = vpop.f32.mrb[0].mxu1 }
 0x3f4   : > { %v869_v20 = vadd.f32 %v5068_v18, %v779_v16  ;;  %v863_v23 = vpop.f32.mrb[1].mxu1 }
 0x3f5   : > { %v864_v25 = vadd.f32 %v863_v23, %v778_v17 }
 0x3f6   : > { %v1146_v3 = vadd.f32 %v869_v20, %v6617_v19 }
 0x3f7   : > { %v1145_v28 = vadd.f32 %v864_v25, %v6619_v24 }
 0x3f8   : > { %v1157_v31 = vsel %vm1153_vm3, %v1146_v3, -inf }
 0x3f9   : > { %1158 = vmax.xlane.f32.xlu0 %v1157_v31  ;;  %v1154_v32 = vsel %vm1153_vm3, %v1145_v28, -inf }
 0x3fa   : > { %1155 = vmax.xlane.f32.xlu1 %v1154_v32 }
 0x3fb   : > { %v5075_v34 = vpop.f32.mrb[2].mxu1 }
 0x3fc   : > { %v960_v36 = vadd.f32 %v5075_v34, %v779_v16  ;;  %v5082_v41 = vpop.f32.mrb[8].mxu0  ;;  %v954_v42 = vpop.f32.mrb[3].mxu1 }
 0x3fd   : > { %v1051_v44 = vadd.f32 %v5082_v41, %v779_v16  ;;  %v955_v46 = vadd.f32 %v954_v42, %v778_v17  ;;  %v1045_v48 = vpop.f32.mrb[9].mxu0 }
 0x3fe   : > { %v1046_v21 = vadd.f32 %v1045_v48, %v778_v17  ;;  %v1148_v51 = vadd.f32 %v960_v36, %v6625_v35 }
 0x3ff   : > { %v1147_v53 = vadd.f32 %v955_v46, %v6627_v43  ;;  %v1150_v55 = vadd.f32 %v1051_v44, %v6629_v49 }
 0x400   : > { %v1163_v54 = vsel %vm1153_vm3, %v1148_v51, -inf  ;;  %v1149_v29 = vadd.f32 %v1046_v21, %v6632_v52 }
 0x401   : > { %1164 = vmax.xlane.f32.xlu1 %v1163_v54  ;;  %v1160_v56 = vsel %vm1153_vm3, %v1147_v53, -inf  ;;  %v1169_v57 = vsel %vm1153_vm3, %v1150_v55, -inf }
 0x402   : > { %1161 = vmax.xlane.f32.xlu0 %v1160_v56  ;;  %v1166_v62 = vsel %vm1153_vm3, %v1149_v29, -inf }
 0x405   : > { %1170 = vmax.xlane.f32.xlu1 %v1169_v57 }
 0x406   : > { %1167 = vmax.xlane.f32.xlu0 %v1166_v62 }
 0x444   : > { %v5089_v63 = vpop.f32.mrb[4].mxu1 }
 0x445   : > { %v1142_v30 = vadd.f32 %v5089_v63, %v779_v16  ;;  %v1136_v1 = vpop.f32.mrb[5].mxu1 }
 0x446   : > { %v1137_v39 = vadd.f32 %v1136_v1, %v778_v17 }
 0x447   : > { %v1152_v4 = vadd.f32 %v1142_v30, %v6641_v0 }
 0x448   : > { %v1151_v5 = vadd.f32 %v1137_v39, %v6643_v2 }
 0x449   : > { %v1175_v6 = vsel %vm1153_vm3, %v1152_v4, -inf }
 0x44a   : > { %1176 = vmax.xlane.f32.xlu1 %v1175_v6  ;;  %v1172_v7 = vsel %vm1153_vm3, %v1151_v5, -inf }
 0x44b   : > { %1173 = vmax.xlane.f32.xlu0 %v1172_v7 }
 0x45b   : > { %5682 = vrot.lane.b32.xlu1 %v6545_v38, %s6142_s23 }
 0x461   : > { %5677 = vrot.lane.b32.xlu0 %v6540_v33, %s6142_s23 }
 0x486   : > { %v1159_v9 = vpop.xlane.xlu0 %1158 }
 0x487   : > { %v1179_v40 = vsub.f32 %v1146_v3, %v1159_v9  ;;  %v1156_v10 = vpop.xlane.xlu1 %1155 }
 0x488   : > { %v1178_v47 = vsub.f32 %v1145_v28, %v1156_v10 }
 0x489   : > { %v1188_v11 = vmul.f32 1.442695, %v1179_v40 }
 0x48a   : > { %v1186_v12 = vmul.f32 1.442695, %v1178_v47 }
 0x48b   : > { %5807 = vpow2.f32 %v1188_v11 }
 0x48c   : > { %5809 = vpow2.f32 %v1186_v12 }
 0x48e   : > { %v1165_v16 = vpop.xlane.xlu1 %1164 }
 0x48f   : > { %v1181_v17 = vsub.f32 %v1148_v51, %v1165_v16  ;;  %v1162_v18 = vpop.xlane.xlu0 %1161 }
 0x490   : > { %v1180_v20 = vsub.f32 %v1147_v53, %v1162_v18  ;;  %v5670_v18 = vunpack.i.h.bf16 %v6653_v8 }
 0x491   : > { %v1192_v23 = vmul.f32 1.442695, %v1181_v17 }
 0x492   : > { %v1190_v25 = vmul.f32 1.442695, %v1180_v20  ;;  %v1171_v31 = vpop.xlane.xlu1 %1170  ;;  %v5669_v20 = vunpack.i.l.bf16 %v6653_v8 }
 0x493   : > { %5811 = vpow2.f32 %v1192_v23  ;;  %v1183_v32 = vsub.f32 %v1150_v55, %v1171_v31  ;;  %v1168_v53 = vpop.xlane.xlu0 %1167 }
 0x494   : > { %5813 = vpow2.f32 %v1190_v25  ;;  %v1182_v54 = vsub.f32 %v1149_v29, %v1168_v53  ;;  %v5390_v31 = vpack.c.bf16 %v5670_v18, %v5669_v20 }
 0x495   : > { %v6655_v34 = vpop.eup %5807  ;;  %v1196_v36 = vmul.f32 1.442695, %v1183_v32 }
 0x496   : > { %v5810_v3 = vpop.eup %5809  ;;  %v1205_v28 = vsel %vm1153_vm3, %v6655_v34, 0.0  ;;  %v1194_v55 = vmul.f32 1.442695, %v1182_v54 }
 0x497   : > { %5815 = vpow2.f32 %v1196_v36  ;;  %1206 = vadd.xlane.f32.xlu1 %v1205_v28  ;;  %v1202_v41 = vsel %vm1153_vm3, %v5810_v3, 0.0 }
 0x498   : > { %1203 = vadd.xlane.f32.xlu0 %v1202_v41  ;;  %5817 = vpow2.f32 %v1194_v55 }
 0x49d   : > { %v6660_v42 = vpop.eup %5811 }
 0x49e   : > { %v6662_v44 = vpop.eup %5813  ;;  %v1211_v46 = vsel %vm1153_vm3, %v6660_v42, 0.0 }
 0x49f   : > { %1212 = vadd.xlane.f32.xlu1 %v1211_v46  ;;  %v1208_v48 = vsel %vm1153_vm3, %v6662_v44, 0.0 }
 0x4a0   : > { %1209 = vadd.xlane.f32.xlu0 %v1208_v48 }
 0x4a1   : > { %v6668_v21 = vpop.eup %5815 }
 0x4a2   : > { %v1217_v51 = vsel %vm1153_vm3, %v6668_v21, 0.0  ;;  %v6674_v56 = vpop.eup %5817 }
 0x4a3   : > { %1218 = vadd.xlane.f32.xlu1 %v1217_v51  ;;  %v1214_v57 = vsel %vm1153_vm3, %v6674_v56, 0.0 }
 0x4b4   : > { %1596 = vrot.lane.b32.xlu1 %v6571_v58, %s6143_s11 }
 0x4b6   : > { %1594 = vrot.lane.b32.xlu0 %v6535_v27, %s6143_s11 }
 0x4d5   : > { %1215 = vadd.xlane.f32.xlu0 %v1214_v57 }
 0x4d7   : > { %v1177_v62 = vpop.xlane.xlu1 %1176 }
 0x4d8   : > { %v1185_v63 = vsub.f32 %v1152_v4, %v1177_v62  ;;  %v1174_v30 = vpop.xlane.xlu0 %1173 }
 0x4d9   : > { %v1184_v1 = vsub.f32 %v1151_v5, %v1174_v30 }
 0x4da   : > { %v1200_v39 = vmul.f32 1.442695, %v1185_v63 }
 0x4db   : > { %v1198_v6 = vmul.f32 1.442695, %v1184_v1  ;;  %v5683_v4 = vpop.permute.xlu1 %5682 }
 0x4dc   : > { %5819 = vpow2.f32 %v1200_v39  ;;  %v5678_v5 = vpop.permute.xlu0 %5677  ;;  %v5684_v54 = vunpack.i.l.bf16 %v5683_v4 }
 0x4dd   : > { %5821 = vpow2.f32 %v1198_v6  ;;  %v5680_v28 = vunpack.i.h.bf16 %v5678_v5  ;;  %v5679_v41 = vunpack.i.l.bf16 %v5678_v5 }
 0x4e6   : > { %v6678_v7 = vpop.eup %5819 }
 0x4e7   : > { %v6680_v9 = vpop.eup %5821  ;;  %v1223_v29 = vsel %vm1153_vm3, %v6678_v7, 0.0 }
 0x4e8   : > { %1224 = vadd.xlane.f32.xlu1 %v1223_v29  ;;  %v1220_v40 = vsel %vm1153_vm3, %v6680_v9, 0.0 }
 0x4e9   : > { %1221 = vadd.xlane.f32.xlu0 %v1220_v40 }
 0x4f9   : > { %1685 = vrot.lane.b32.xlu1 %v6573_v59, %s6143_s11 }
 0x4fd   : > { %1776 = vrot.lane.b32.xlu1 %v6543_v37, %s6143_s11 }
 0x4ff   : > { %5687 = vrot.lane.b32.xlu0 %v6554_v45, %s6142_s23 }
 0x501   : > { %1867 = vrot.lane.b32.xlu1 %v6589_v61, %s6143_s11 }
 0x503   : > { %1687 = vrot.lane.b32.xlu0 %v6585_v60, %s6143_s11 }
 0x507   : > { %1778 = vrot.lane.b32.xlu0 %v6587_v22, %s6143_s11 }
 0x50b   : > { %1869 = vrot.lane.b32.xlu0 %v6604_v14, %s6143_s11  ;;  %s6148_s11 = smov 72  }
 0x524   : > { %v1207_v10 = vpop.xlane.xlu1 %1206 }
 0x525   : > { %5823 = vrcp.f32 %v1207_v10  ;;  %v1204_v47 = vpop.xlane.xlu0 %1203 }
 0x526   : > { %5825 = vrcp.f32 %v1204_v47 }
 0x52c   : > { %v1213_v11 = vpop.xlane.xlu1 %1212 }
 0x52d   : > { %5827 = vrcp.f32 %v1213_v11  ;;  %v1210_v12 = vpop.xlane.xlu0 %1209 }
 0x52e   : > { %5829 = vrcp.f32 %v1210_v12 }
 0x52f   : > { %v5824_v16 = vpop.eup %5823 }
 0x530   : > { %v5826_v17 = vpop.eup %5825  ;;  %v1229_v25 = vmul.f32 %v5824_v16, %v6655_v34  ;;  %v5396_v34 = vpack.c.bf16 %v5680_v28, %v5679_v41 }
 0x531   : > { %v1227_v23 = vmul.f32 %v5826_v17, %v5810_v3  ;;  %v1219_v3 = vpop.xlane.xlu1 %1218 }
 0x532   : > { %5831 = vrcp.f32 %v1219_v3 }
 0x533   : > { %5094 = vmatprep.mubr.msk.f32.mxu0 %vm1153_vm3, %v1227_v23  ;;  %v4749_v23 = vld [vmem:[%s7158_s6 + $0x18] sm:$0xff] }
 0x534   : > { %5095 = vmatmul.mubr.msk.f32.vlgmr.msra.gmra.mrb[10].mxu0 %vm1153_vm3, %v1229_v25  ;;  %v4748_v25 = vld [vmem:[%s7158_s6 + $0x10] sm:$0xff] }
 0x535   : > { %5385 = vmatpush3.bf16.msra.mxu0 %v6601_v13  ;;  %v1595_v13 = vpop.permute.xlu0 %1594 }
 0x536   : > { %5392 = vmatprep.subr.msk.bf16.mxu0 %vm6561_vm2, %v5390_v31 }
 0x537   : > { %v5828_v32 = vpop.eup %5827 }
 0x538   : > { %v5830_v36 = vpop.eup %5829  ;;  %v1233_v8 = vmul.f32 %v5828_v32, %v6660_v42 }
 0x539   : > { %v1231_v46 = vmul.f32 %v5830_v36, %v6662_v44  ;;  %v5685_v44 = vunpack.i.h.bf16 %v5683_v4 }
 0x53b   : > { %5101 = vmatprep.mubr.msk.f32.mxu1 %vm1153_vm3, %v1231_v46  ;;  %v5402_v57 = vpack.c.bf16 %v5685_v44, %v5684_v54 }
 0x53c   : > { %5102 = vmatmul.mubr.msk.f32.vlgmr.msra.gmra.mrb[6].mxu1 %vm1153_vm3, %v1233_v8  ;;  %v5832_v51 = vpop.eup %5831 }
 0x53d   : > { %5389 = vmatpush3.bf16.msra.mxu1 %v6608_v15  ;;  %v1237_v55 = vmul.f32 %v5832_v51, %v6668_v21  ;;  %v1597_v15 = vpop.permute.xlu1 %1596 }
 0x53e   : > { %5398 = vmatprep.subr.msk.bf16.mxu1 %vm6561_vm2, %v5396_v34 }
 0x562   : > { %v1216_v48 = vpop.xlane.xlu0 %1215 }
 0x563   : > { %5833 = vrcp.f32 %v1216_v48 }
 0x56d   : > { %v5834_v53 = vpop.eup %5833 }
 0x56e   : > { %v1235_v42 = vmul.f32 %v5834_v53, %v6674_v56 }
 0x570   : > { %5108 = vmatprep.mubr.msk.f32.mxu0 %vm1153_vm3, %v1235_v42 }
 0x571   : > { %5109 = vmatmul.mubr.msk.f32.vlgmr.msra.gmra.mrb[12].mxu0 %vm1153_vm3, %v1237_v55 }
 0x572   : > { %5395 = vmatpush3.bf16.xpose.msk.msra.mxu0 %vm6561_vm2, %v5390_v31  ;;  %5122 = vmatprep.mubr.msk.f32.mxu0 %vm786_vm1, %v1595_v13 }
 0x573   : > { %5404 = vmatprep.subr.msk.bf16.mxu0 %vm6561_vm2, %v5402_v57 }
 0x575   : > { %v1225_v62 = vpop.xlane.xlu1 %1224 }
 0x576   : > { %5835 = vrcp.f32 %v1225_v62  ;;  %v1222_v63 = vpop.xlane.xlu0 %1221 }
 0x577   : > { %5837 = vrcp.f32 %v1222_v63 }
 0x579   : > { %5123 = vmatmul.mubr.msk.f32.vlgmr.msra.gmra.mrb[14].mxu0 %vm786_vm1, %v1597_v15  ;;  %v1686_v21 = vpop.permute.xlu1 %1685 }
 0x57a   : > { %5407 = vmatpush3.bf16.xpose.msk.msra.mxu0 %vm6561_vm2, %v5402_v57  ;;  %v5688_v56 = vpop.permute.xlu0 %5687 }
 0x57b   : > { %v5690_v29 = vunpack.i.h.bf16 %v5688_v56  ;;  %v5689_v40 = vunpack.i.l.bf16 %v5688_v56 }
 0x57d   : > { %v1777_v30 = vpop.permute.xlu1 %1776  ;;  %v5408_v47 = vpack.c.bf16 %v5690_v29, %v5689_v40 }
 0x57e   : > { %v1688_v1 = vpop.permute.xlu0 %1687  ;;  %5136 = vmatprep.mubr.msk.f32.mxu0 %vm786_vm1, %v1777_v30 }
 0x580   : > { %v5836_v39 = vpop.eup %5835 }
 0x581   : > { %v5838_v6 = vpop.eup %5837  ;;  %v1241_v10 = vmul.f32 %v5836_v39, %v6678_v7  ;;  %v1868_v11 = vpop.permute.xlu1 %1867 }
 0x582   : > { %v1779_v4 = vpop.permute.xlu0 %1778  ;;  %v1239_v5 = vmul.f32 %v5838_v6, %v6680_v9 }
 0x583   : > { %5137 = vmatmul.mubr.msk.f32.vlgmr.msra.gmra.mrb[16].mxu0 %vm786_vm1, %v1779_v4 }
 0x584   : > { %5115 = vmatprep.mubr.msk.f32.mxu1 %vm1153_vm3, %v1239_v5 }
 0x585   : > { %5116 = vmatmul.mubr.msk.f32.vlgmr.msra.gmra.mrb[8].mxu1 %vm1153_vm3, %v1241_v10 }
 0x586   : > { %5401 = vmatpush3.bf16.xpose.msk.msra.mxu1 %vm6561_vm2, %v5396_v34  ;;  %5129 = vmatprep.mubr.msk.f32.mxu1 %vm786_vm1, %v1686_v21  ;;  %v1870_v7 = vpop.permute.xlu0 %1869 }
 0x587   : > { %5410 = vmatprep.subr.msk.bf16.mxu1 %vm6561_vm2, %v5408_v47 }
 0x58d   : > { %5130 = vmatmul.mubr.msk.f32.vlgmr.msra.gmra.mrb[10].mxu1 %vm786_vm1, %v1688_v1 }
 0x58e   : > { %5413 = vmatpush3.bf16.xpose.msk.msra.mxu1 %vm6561_vm2, %v5408_v47  ;;  %5143 = vmatprep.mubr.msk.f32.mxu1 %vm786_vm1, %v1868_v11 }
 0x595   : > { %5144 = vmatmul.mubr.msk.f32.vlgmr.msra.gmra.mrb[12].mxu1 %vm786_vm1, %v1870_v7 }
 0x607   : > { %v6737_v9 = vpop.f32.mrb[10].mxu0 }
 0x608   : > { %v6739_v12 = vpop.f32.mrb[11].mxu0 }
 0x60f   : > { %v6741_v16 = vpop.f32.mrb[6].mxu1 }
 0x610   : > { %v6743_v17 = vpop.f32.mrb[7].mxu1 }
 0x644   : > { %v6745_v18 = vpop.f32.mrb[12].mxu0 }
 0x645   : > { %v6747_v20 = vpop.f32.mrb[13].mxu0 }
 0x64c   : > { %v5124_v31 = vpop.f32.mrb[14].mxu0 }
 0x64d   : > { %v1682_v32 = vadd.f32 %v5124_v31, %v4749_v23  ;;  %v1676_v36 = vpop.f32.mrb[15].mxu0 }
 0x64e   : > { %v1677_v28 = vadd.f32 %v4748_v25, %v1676_v36 }
 0x64f   : > { %v1959_v41 = vadd.f32 %v1682_v32, %v6617_v19 }
 0x650   : > { %v1958_v46 = vadd.f32 %v1677_v28, %v6619_v24 }
 0x651   : > { %v1969_v8 = vsel %vm1153_vm3, %v1959_v41, -inf }
 0x652   : > { %1970 = vmax.xlane.f32.xlu0 %v1969_v8  ;;  %v1966_v34 = vsel %vm1153_vm3, %v1958_v46, -inf }
 0x653   : > { %1967 = vmax.xlane.f32.xlu1 %v1966_v34 }
 0x656   : > { %v5138_v13 = vpop.f32.mrb[16].mxu0 }
 0x657   : > { %v1858_v3 = vpop.f32.mrb[17].mxu0  ;;  %v1864_v44 = vadd.f32 %v5138_v13, %v4749_v23 }
 0x658   : > { %v6759_v48 = vpop.f32.mrb[8].mxu1  ;;  %v1859_v55 = vadd.f32 %v4748_v25, %v1858_v3 }
 0x659   : > { %v6761_v51 = vpop.f32.mrb[9].mxu1  ;;  %v1963_v21 = vadd.f32 %v1864_v44, %v6629_v49 }
 0x65a   : > { %v1962_v30 = vadd.f32 %v1859_v55, %v6632_v52 }
 0x65b   : > { %v1981_v29 = vsel %vm1153_vm3, %v1963_v21, -inf }
 0x65c   : > { %v1978_v4 = vsel %vm1153_vm3, %v1962_v30, -inf }
 0x660   : > { %v5131_v53 = vpop.f32.mrb[10].mxu1 }
 0x661   : > { %v1773_v54 = vadd.f32 %v5131_v53, %v4749_v23  ;;  %v1767_v42 = vpop.f32.mrb[11].mxu1 }
 0x662   : > { %v1768_v57 = vadd.f32 %v4748_v25, %v1767_v42 }
 0x663   : > { %v1961_v15 = vadd.f32 %v1773_v54, %v6625_v35 }
 0x664   : > { %v1960_v62 = vadd.f32 %v1768_v57, %v6627_v43 }
 0x665   : > { %v1975_v63 = vsel %vm1153_vm3, %v1961_v15, -inf }
 0x666   : > { %1976 = vmax.xlane.f32.xlu1 %v1975_v63  ;;  %v1972_v56 = vsel %vm1153_vm3, %v1960_v62, -inf }
 0x667   : > { %1973 = vmax.xlane.f32.xlu0 %v1972_v56 }
 0x668   : > { %v5145_v1 = vpop.f32.mrb[12].mxu1 }
 0x669   : > { %v1955_v39 = vadd.f32 %v5145_v1, %v4749_v23  ;;  %v1949_v6 = vpop.f32.mrb[13].mxu1 }
 0x66a   : > { %v1950_v40 = vadd.f32 %v4748_v25, %v1949_v6  ;;  %1982 = vmax.xlane.f32.xlu1 %v1981_v29 }
 0x66b   : > { %1979 = vmax.xlane.f32.xlu0 %v1978_v4  ;;  %v1965_v5 = vadd.f32 %v1955_v39, %v6641_v0 }
 0x66c   : > { %v1964_v10 = vadd.f32 %v1950_v40, %v6643_v2 }
 0x66d   : > { %v1987_v47 = vsel %vm1153_vm3, %v1965_v5, -inf }
 0x66e   : > { %1988 = vmax.xlane.f32.xlu1 %v1987_v47  ;;  %v1984_v11 = vsel %vm1153_vm3, %v1964_v10, -inf }
 0x66f   : > { %1985 = vmax.xlane.f32.xlu0 %v1984_v11 }
 0x67f   : > { %5697 = vrot.lane.b32.xlu1 %v6540_v33, %s6144_s18 }
 0x685   : > { %5692 = vrot.lane.b32.xlu0 %v6533_v26, %s6144_s18 }
 0x6df   : > { %v1971_v7 = vpop.xlane.xlu0 %1970 }
 0x6e0   : > { %v1991_v23 = vsub.f32 %v1959_v41, %v1971_v7  ;;  %v1968_v25 = vpop.xlane.xlu1 %1967 }
 0x6e1   : > { %v1990_v31 = vsub.f32 %v1958_v46, %v1968_v25 }
 0x6e2   : > { %v2000_v32 = vmul.f32 1.442695, %v1991_v23 }
 0x6e3   : > { %v1998_v36 = vmul.f32 1.442695, %v1990_v31 }
 0x6e4   : > { %5839 = vpow2.f32 %v2000_v32 }
 0x6e5   : > { %5841 = vpow2.f32 %v1998_v36 }
 0x6ee   : > { %v6779_v28 = vpop.eup %5839 }
 0x6ef   : > { %v2017_v8 = vsel %vm1153_vm3, %v6779_v28, 0.0  ;;  %v6783_v34 = vpop.eup %5841 }
 0x6f0   : > { %2018 = vadd.xlane.f32.xlu0 %v2017_v8  ;;  %v2014_v3 = vsel %vm1153_vm3, %v6783_v34, 0.0 }
 0x6f3   : > { %v1977_v13 = vpop.xlane.xlu1 %1976 }
 0x6f4   : > { %v1993_v53 = vsub.f32 %v1961_v15, %v1977_v13  ;;  %v1974_v41 = vpop.xlane.xlu0 %1973  ;;  %2015 = vadd.xlane.f32.xlu0 %v2014_v3 }
 0x6f5   : > { %v1992_v44 = vsub.f32 %v1960_v62, %v1974_v41 }
 0x6f6   : > { %v2004_v46 = vmul.f32 1.442695, %v1993_v53 }
 0x6f7   : > { %v1983_v54 = vpop.xlane.xlu1 %1982  ;;  %v2002_v63 = vmul.f32 1.442695, %v1992_v44 }
 0x6f8   : > { %5843 = vpow2.f32 %v2004_v46  ;;  %v1995_v42 = vsub.f32 %v1963_v21, %v1983_v54  ;;  %v1980_v55 = vpop.xlane.xlu0 %1979 }
 0x6f9   : > { %v1994_v57 = vsub.f32 %v1962_v30, %v1980_v55 }
 0x6fa   : > { %v2008_v56 = vmul.f32 1.442695, %v1995_v42 }
 0x6fb   : > { %v2006_v1 = vmul.f32 1.442695, %v1994_v57  ;;  %v1989_v39 = vpop.xlane.xlu1 %1988 }
 0x6fc   : > { %5845 = vpow2.f32 %v2008_v56  ;;  %v1997_v6 = vsub.f32 %v1965_v5, %v1989_v39  ;;  %v1986_v29 = vpop.xlane.xlu0 %1985 }
 0x6fd   : > { %5847 = vpow2.f32 %v2006_v1  ;;  %v1996_v40 = vsub.f32 %v1964_v10, %v1986_v29 }
 0x6fe   : > { %5849 = vpow2.f32 %v2002_v63  ;;  %v2012_v15 = vmul.f32 1.442695, %v1997_v6 }
 0x6ff   : > { %v2010_v4 = vmul.f32 1.442695, %v1996_v40  ;;  %v5698_v47 = vpop.permute.xlu1 %5697 }
 0x700   : > { %v5700_v11 = vunpack.i.h.bf16 %v5698_v47  ;;  %v5699_v62 = vunpack.i.l.bf16 %v5698_v47  ;;  %v5693_v7 = vpop.permute.xlu0 %5692 }
 0x701   : > { %5851 = vpow2.f32 %v2010_v4  ;;  %v5695_v21 = vunpack.i.h.bf16 %v5693_v7  ;;  %v5694_v23 = vunpack.i.l.bf16 %v5693_v7 }
 0x702   : > { %v6787_v30 = vpop.eup %5843  ;;  %5853 = vpow2.f32 %v2012_v15  ;;  %v5418_v25 = vpack.c.bf16 %v5700_v11, %v5699_v62 }
 0x703   : > { %v5414_v31 = vpack.c.bf16 %v5695_v21, %v5694_v23  ;;  %v2023_v5 = vsel %vm1153_vm3, %v6787_v30, 0.0 }
 0x704   : > { %2024 = vadd.xlane.f32.xlu1 %v2023_v5  ;;  %5419 = vmatprep.subr.bf16.mxu1 %v5418_v25 }
 0x705   : > { %5415 = vmatprep.subr.bf16.mxu0 %v5414_v31  ;;  %5421 = vmatpush3.bf16.msra.mxu1 %v5418_v25 }
 0x706   : > { %v6791_v10 = vpop.eup %5845  ;;  %5417 = vmatpush3.bf16.msra.mxu0 %v5414_v31 }
 0x707   : > { %v5848_v32 = vpop.eup %5847  ;;  %v2029_v36 = vsel %vm1153_vm3, %v6791_v10, 0.0 }
 0x708   : > { %v6795_v8 = vpop.eup %5849  ;;  %2030 = vadd.xlane.f32.xlu1 %v2029_v36  ;;  %v2026_v13 = vsel %vm1153_vm3, %v5848_v32, 0.0 }
 0x709   : > { %2027 = vadd.xlane.f32.xlu0 %v2026_v13  ;;  %v2020_v53 = vsel %vm1153_vm3, %v6795_v8, 0.0 }
 0x70b   : > { %v6798_v3 = vpop.eup %5851 }
 0x70c   : > { %v6802_v41 = vpop.eup %5853  ;;  %2021 = vadd.xlane.f32.xlu1 %v2020_v53  ;;  %v2032_v46 = vsel %vm1153_vm3, %v6798_v3, 0.0 }
 0x70d   : > { %2033 = vadd.xlane.f32.xlu0 %v2032_v46  ;;  %v2035_v44 = vsel %vm1153_vm3, %v6802_v41, 0.0 }
 0x710   : > { %2036 = vadd.xlane.f32.xlu1 %v2035_v44 }
 0x721   : > { %5702 = vrot.lane.b32.xlu1 %v6545_v38, %s6144_s18 }
 0x723   : > { %5707 = vrot.lane.b32.xlu0 %v6554_v45, %s6144_s18  ;;  %s6061_s18 = sshll.u32 %s6151_s12, 4  ;;  %s6062_s18 = int_to_ptr.vmem [resolvable:$false] %s6061_s18 }
 0x724   : > { %p6064_p12 = scmp.lt.s32.totalorder %s7106_s21, %s6062_s18 }
 0x725   : > { %5712 = vrot.lane.b32.xlu1 %v6533_v26, %s6145_s28 }
 0x727   : > { %5717 = vrot.lane.b32.xlu0 %v6540_v33, %s6145_s28 }
 0x729   : > { %2664 = vrot.lane.b32.xlu1 %v6535_v27, %s6146_s27 }
 0x72b   : > { %2666 = vrot.lane.b32.xlu0 %v6571_v58, %s6146_s27 }
 0x72d   : > { %5722 = vrot.lane.b32.xlu1 %v6545_v38, %s6145_s28 }
 0x72f   : > { %2755 = vrot.lane.b32.xlu0 %v6573_v59, %s6146_s27 }
 0x731   : > { %2757 = vrot.lane.b32.xlu1 %v6585_v60, %s6146_s27 }
 0x733   : > { %5727 = vrot.lane.b32.xlu0 %v6554_v45, %s6145_s28  ;;  %s6150_s28 = smov 40  }
 0x735   : > { %2846 = vrot.lane.b32.xlu1 %v6543_v37, %s6146_s27 }
 0x737   : > { %2848 = vrot.lane.b32.xlu0 %v6587_v22, %s6146_s27 }
 0x739   : > { %2937 = vrot.lane.b32.xlu1 %v6589_v61, %s6146_s27 }
 0x73b   : > { %2939 = vrot.lane.b32.xlu0 %v6604_v14, %s6146_s27 }
 0x77d   : > { %v2019_v54 = vpop.xlane.xlu0 %2018 }
 0x77e   : > { %5855 = vrcp.f32 %v2019_v54 }
 0x781   : > { %v2016_v42 = vpop.xlane.xlu0 %2015 }
 0x782   : > { %5857 = vrcp.f32 %v2016_v42  ;;  %v2402_v42 = vld [vmem:[#allocation8 + $0x8] sm:$0xff] }
 0x788   : > { %v5856_v55 = vpop.eup %5855 }
 0x789   : > { %v2041_v56 = vmul.f32 %v5856_v55, %v6779_v28 }
 0x78c   : > { %v5858_v57 = vpop.eup %5857 }
 0x78d   : > { %v2039_v63 = vmul.f32 %v5858_v57, %v6783_v34 }
 0x78f   : > { %5150 = vmatprep.mubr.msk.f32.mxu0 %vm1153_vm3, %v2039_v63 }
 0x790   : > { %5151 = vmatmul.mubr.msk.f32.vlgmr.msra.gmra.mrb[18].mxu0 %vm1153_vm3, %v2041_v56 }
 0x791   : > { %v2025_v1 = vpop.xlane.xlu1 %2024 }
 0x795   : > { %v2031_v39 = vpop.xlane.xlu1 %2030 }
 0x796   : > { %v2028_v6 = vpop.xlane.xlu0 %2027 }
 0x797   : > { %5859 = vrcp.f32 %v2028_v6 }
 0x798   : > { %5861 = vrcp.f32 %v2025_v1 }
 0x799   : > { %5863 = vrcp.f32 %v2031_v39  ;;  %v2022_v29 = vpop.xlane.xlu1 %2021 }
 0x79a   : > { %5865 = vrcp.f32 %v2022_v29  ;;  %v2034_v40 = vpop.xlane.xlu0 %2033 }
 0x79b   : > { %5867 = vrcp.f32 %v2034_v40 }
 0x79d   : > { %v2037_v15 = vpop.xlane.xlu1 %2036 }
 0x79e   : > { %5869 = vrcp.f32 %v2037_v15  ;;  %v5708_v4 = vpop.permute.xlu0 %5707 }
 0x79f   : > { %v5710_v34 = vunpack.i.h.bf16 %v5708_v4  ;;  %v5709_v47 = vunpack.i.l.bf16 %v5708_v4 }
 0x7a1   : > { %v5860_v28 = vpop.eup %5859  ;;  %v5426_v11 = vpack.c.bf16 %v5710_v34, %v5709_v47  ;;  %v5703_v62 = vpop.permute.xlu1 %5702 }
 0x7a2   : > { %v5862_v7 = vpop.eup %5861  ;;  %v5705_v21 = vunpack.i.h.bf16 %v5703_v62  ;;  %v5704_v23 = vunpack.i.l.bf16 %v5703_v62  ;;  %v2047_v25 = vmul.f32 %v5860_v28, %v5848_v32 }
 0x7a3   : > { %v5864_v31 = vpop.eup %5863  ;;  %5427 = vmatprep.subr.bf16.mxu1 %v5426_v11  ;;  %v2045_v44 = vmul.f32 %v5862_v7, %v6787_v30 }
 0x7a4   : > { %v5866_v5 = vpop.eup %5865  ;;  %v5422_v36 = vpack.c.bf16 %v5705_v21, %v5704_v23  ;;  %5164 = vmatprep.mubr.msk.f32.mxu0 %vm1153_vm3, %v2047_v25  ;;  %v2049_v55 = vmul.f32 %v5864_v31, %v6791_v10  ;;  %v1590_v10 = vld [vmem:[#allocation8] sm:$0xff] }
 0x7a5   : > { %v5868_v13 = vpop.eup %5867  ;;  %v5713_v53 = vpop.permute.xlu1 %5712  ;;  %v2043_v46 = vmul.f32 %v5866_v5, %v6795_v8 }
 0x7a6   : > { %5423 = vmatprep.subr.bf16.mxu0 %v5422_v36  ;;  %v2051_v54 = vmul.f32 %v5868_v13, %v6798_v3  ;;  %v5715_v57 = vunpack.i.h.bf16 %v5713_v53  ;;  %v5714_v63 = vunpack.i.l.bf16 %v5713_v53 }
 0x7a7   : > { %5157 = vmatprep.mubr.msk.f32.mxu1 %vm1153_vm3, %v2043_v46  ;;  %5425 = vmatpush3.bf16.msra.mxu0 %v5422_v36 }
 0x7a8   : > { %v5870_v32 = vpop.eup %5869  ;;  %5158 = vmatmul.mubr.msk.f32.vlgmr.msra.gmra.mrb[14].mxu1 %vm1153_vm3, %v2045_v44  ;;  %5174 = vmatprep.subr.mxu0 %v2402_v42  ;;  %v5430_v30 = vpack.c.bf16 %v5715_v57, %v5714_v63 }
 0x7a9   : > { %v2053_v56 = vmul.f32 %v5870_v32, %v6802_v41  ;;  %5429 = vmatpush3.bf16.msra.mxu1 %v5426_v11  ;;  %5171 = vmatprep.mubr.msk.f32.mxu1 %vm1153_vm3, %v2051_v54  ;;  %v5718_v41 = vpop.permute.xlu0 %5717  ;;  %v2665_v39 = vpop.permute.xlu1 %2664  ;;  %v4791_v54 = vld [vmem:[%s7158_s6 + $0x28] sm:$0xff] }
 0x7aa   : > { %5165 = vmatmul.mubr.msk.f32.vlgmr.msra.gmra.mrb[20].mxu0 %vm1153_vm3, %v2049_v55  ;;  %5510 = vmatprep.subr.mxu1 %v2402_v42  ;;  %v5719_v1 = vunpack.i.l.bf16 %v5718_v41 }
 0x7ab   : > { %5175 = vmatpush3.msra.mxu0 %v2402_v42 }
 0x7ac   : > { %5172 = vmatmul.mubr.msk.f32.vlgmr.msra.gmra.mrb[16].mxu1 %vm1153_vm3, %v2053_v56  ;;  %5188 = vmatprep.subr.mxu0 %v1590_v10 }
 0x7ad   : > { %5511 = vmatpush3.msra.mxu1 %v2402_v42  ;;  %v5723_v29 = vpop.permute.xlu1 %5722  ;;  %v4790_v42 = vld [vmem:[%s7158_s6 + $0x20] sm:$0xff] }
 0x7ae   : > { %5432 = vmatprep.subr.msk.bf16.mxu1 %vm6561_vm2, %v5430_v30  ;;  %v5725_v15 = vunpack.i.h.bf16 %v5723_v29  ;;  %v5724_v4 = vunpack.i.l.bf16 %v5723_v29 }
 0x7b0   : > { %v5442_v34 = vpack.c.bf16 %v5725_v15, %v5724_v4 }
 0x7b1   : > { %v2758_v28 = vpop.permute.xlu1 %2757 }
 0x7b5   : > { %v2847_v21 = vpop.permute.xlu1 %2846 }
 0x7b9   : > { %v2938_v25 = vpop.permute.xlu1 %2937 }
 0x863   : > { %v5152_v8 = vpop.f32.mrb[18].mxu0 }
 0x864   : > { %v2132_v3 = vpop.f32.mrb[19].mxu0 }
 0x865   : > { %5176 = vmatprep.mubr.msk.f32.mxu0 %vm786_vm1, %v2132_v3 }
 0x866   : > { %5177 = vmatmul.mubr.msk.f32.vlgmr.msra.gmra.mrb[22].mxu0 %vm786_vm1, %v5152_v8 }
 0x867   : > { %5190 = vmatprep.mubr.msk.f32.mxu0 %vm786_vm1, %v6739_v12  ;;  %5189 = vmatpush3.msra.mxu0 %v1590_v10  ;;  %v5720_v12 = vunpack.i.h.bf16 %v5718_v41 }
 0x86e   : > { %5191 = vmatmul.mubr.msk.f32.vlgmr.msra.gmra.mrb[22].mxu0 %vm786_vm1, %v6737_v9 }
 0x86f   : > { %5193 = vmatprep.mubr.msk.f32.mxu0 %vm786_vm1, %v6743_v17 }
 0x872   : > { %5194 = vmatmul.mubr.msk.f32.gmra.mrb[24].mxu0 %vm786_vm1, %v6741_v16  ;;  %v5436_v16 = vpack.c.bf16 %v5720_v12, %v5719_v1 }
 0x873   : > { %5196 = vmatprep.mubr.msk.f32.mxu0 %vm786_vm1, %v6747_v20 }
 0x876   : > { %5197 = vmatmul.mubr.msk.f32.gmra.mrb[26].mxu0 %vm786_vm1, %v6745_v18  ;;  %v2667_v18 = vpop.permute.xlu0 %2666 }
 0x877   : > { %5199 = vmatprep.mubr.msk.f32.mxu0 %vm786_vm1, %v6761_v51 }
 0x87a   : > { %5200 = vmatmul.mubr.msk.f32.gmra.mrb[28].mxu0 %vm786_vm1, %v6759_v48  ;;  %v2756_v40 = vpop.permute.xlu0 %2755 }
 0x87b   : > { %v5159_v9 = vpop.f32.mrb[14].mxu1 }
 0x87c   : > { %v2219_v17 = vpop.f32.mrb[15].mxu1 }
 0x87d   : > { %v5166_v6 = vpop.f32.mrb[20].mxu0  ;;  %5179 = vmatprep.mubr.msk.f32.mxu1 %vm786_vm1, %v2219_v17 }
 0x87e   : > { %v2306_v20 = vpop.f32.mrb[21].mxu0  ;;  %5180 = vmatmul.mubr.msk.f32.vlgmr.msra.gmra.mrb[18].mxu1 %vm786_vm1, %v5159_v9  ;;  %v5728_v47 = vpop.permute.xlu0 %5727 }
 0x87f   : > { %5435 = vmatpush3.bf16.xpose.msk.msra.mxu1 %vm6561_vm2, %v5430_v30  ;;  %v5173_v51 = vpop.f32.mrb[16].mxu1  ;;  %5182 = vmatprep.mubr.msk.f32.mxu1 %vm786_vm1, %v2306_v20  ;;  %v5730_v11 = vunpack.i.h.bf16 %v5728_v47  ;;  %v5729_v62 = vunpack.i.l.bf16 %v5728_v47 }
 0x880   : > { %5438 = vmatprep.subr.msk.bf16.mxu1 %vm6561_vm2, %v5436_v16  ;;  %v2393_v48 = vpop.f32.mrb[17].mxu1 }
 0x881   : > { %v5448_v7 = vpack.c.bf16 %v5730_v11, %v5729_v62 }
 0x882   : > { %5183 = vmatmul.mubr.msk.f32.gmra.mrb[20].mxu1 %vm786_vm1, %v5166_v6  ;;  %v2849_v23 = vpop.permute.xlu0 %2848 }
 0x883   : > { %5185 = vmatprep.mubr.msk.f32.mxu1 %vm786_vm1, %v2393_v48 }
 0x886   : > { %5186 = vmatmul.mubr.msk.f32.gmra.mrb[22].mxu1 %vm786_vm1, %v5173_v51  ;;  %v2940_v31 = vpop.permute.xlu0 %2939 }
 0x887   : > { %5206 = vmatprep.mubr.msk.f32.mxu1 %vm786_vm1, %v2665_v39 }
 0x88a   : > { %5207 = vmatmul.mubr.msk.f32.vlgmr.msra.gmra.mrb[24].mxu1 %vm786_vm1, %v2667_v18 }
 0x88b   : > { %5441 = vmatpush3.bf16.xpose.msk.msra.mxu1 %vm6561_vm2, %v5436_v16  ;;  %5213 = vmatprep.mubr.msk.f32.mxu1 %vm786_vm1, %v2756_v40 }
 0x88c   : > { %5444 = vmatprep.subr.msk.bf16.mxu1 %vm6561_vm2, %v5442_v34 }
 0x892   : > { %5214 = vmatmul.mubr.msk.f32.vlgmr.msra.gmra.mrb[26].mxu1 %vm786_vm1, %v2758_v28 }
 0x893   : > { %5447 = vmatpush3.bf16.xpose.msk.msra.mxu1 %vm6561_vm2, %v5442_v34  ;;  %5220 = vmatprep.mubr.msk.f32.mxu1 %vm786_vm1, %v2847_v21 }
 0x894   : > { %5450 = vmatprep.subr.msk.bf16.mxu1 %vm6561_vm2, %v5448_v7 }
 0x89a   : > { %5221 = vmatmul.mubr.msk.f32.vlgmr.msra.gmra.mrb[28].mxu1 %vm786_vm1, %v2849_v23 }
 0x89b   : > { %5453 = vmatpush3.bf16.xpose.msk.msra.mxu1 %vm6561_vm2, %v5448_v7  ;;  %5227 = vmatprep.mubr.msk.f32.mxu1 %vm786_vm1, %v2938_v25 }
 0x8a2   : > { %5228 = vmatmul.mubr.msk.f32.vlgmr.msra.gmra.mrb[30].mxu1 %vm786_vm1, %v2940_v31 }
 0x951   : > { %v6887_v5 = vpop.f32.mrb[18].mxu1 }
 0x952   : > { %v6889_v36 = vpop.f32.mrb[19].mxu1 }
 0x955   : > { %v6891_v13 = vpop.f32.mrb[20].mxu1 }
 0x956   : > { %v6893_v53 = vpop.f32.mrb[21].mxu1 }
 0x959   : > { %v6895_v46 = vpop.f32.mrb[22].mxu1 }
 0x95a   : > { %v6897_v44 = vpop.f32.mrb[23].mxu1 }
 0x95d   : > { %v5208_v32 = vpop.f32.mrb[24].mxu1 }
 0x95e   : > { %v2752_v55 = vadd.f32 %v5208_v32, %v4791_v54  ;;  %v2746_v57 = vpop.f32.mrb[25].mxu1 }
 0x95f   : > { %v2747_v63 = vadd.f32 %v4790_v42, %v2746_v57 }
 0x960   : > { %v3029_v56 = vadd.f32 %v2752_v55, %v6617_v19 }
 0x961   : > { %v3028_v30 = vadd.f32 %v2747_v63, %v6619_v24 }
 0x962   : > { %v3039_v10 = vsel %vm1153_vm3, %v3029_v56, -inf }
 0x963   : > { %3040 = vmax.xlane.f32.xlu0 %v3039_v10  ;;  %v3036_v8 = vsel %vm1153_vm3, %v3028_v30, -inf }
 0x964   : > { %3037 = vmax.xlane.f32.xlu1 %v3036_v8 }
 0x965   : > { %v5215_v3 = vpop.f32.mrb[26].mxu1 }
 0x966   : > { %v2843_v41 = vadd.f32 %v5215_v3, %v4791_v54  ;;  %v2837_v12 = vpop.f32.mrb[27].mxu1 }
 0x967   : > { %v2838_v1 = vadd.f32 %v4790_v42, %v2837_v12 }
 0x968   : > { %v3031_v9 = vadd.f32 %v2843_v41, %v6625_v35 }
 0x969   : > { %v3030_v17 = vadd.f32 %v2838_v1, %v6627_v43 }
 0x96a   : > { %v3045_v39 = vsel %vm1153_vm3, %v3031_v9, -inf }
 0x96b   : > { %3046 = vmax.xlane.f32.xlu1 %v3045_v39  ;;  %v3042_v19 = vsel %vm1153_vm3, %v3030_v17, -inf }
 0x96c   : > { %3043 = vmax.xlane.f32.xlu0 %v3042_v19 }
 0x96d   : > { %v5222_v24 = vpop.f32.mrb[28].mxu1 }
 0x96e   : > { %v2934_v6 = vadd.f32 %v5222_v24, %v4791_v54  ;;  %v2928_v16 = vpop.f32.mrb[29].mxu1 }
 0x96f   : > { %v2929_v20 = vadd.f32 %v4790_v42, %v2928_v16 }
 0x970   : > { %v3033_v18 = vadd.f32 %v2934_v6, %v6629_v49 }
 0x971   : > { %v3032_v51 = vadd.f32 %v2929_v20, %v6632_v52 }
 0x972   : > { %v3051_v48 = vsel %vm1153_vm3, %v3033_v18, -inf }
 0x973   : > { %3052 = vmax.xlane.f32.xlu1 %v3051_v48  ;;  %v3048_v35 = vsel %vm1153_vm3, %v3032_v51, -inf }
 0x974   : > { %3049 = vmax.xlane.f32.xlu0 %v3048_v35 }
 0x975   : > { %v5229_v43 = vpop.f32.mrb[30].mxu1 }
 0x976   : > { %v3025_v29 = vadd.f32 %v5229_v43, %v4791_v54  ;;  %v3019_v40 = vpop.f32.mrb[31].mxu1 }
 0x977   : > { %v3020_v15 = vadd.f32 %v4790_v42, %v3019_v40 }
 0x978   : > { %v3035_v4 = vadd.f32 %v3025_v29, %v6641_v0 }
 0x979   : > { %v3034_v34 = vadd.f32 %v3020_v15, %v6643_v2 }
 0x97a   : > { %v3057_v47 = vsel %vm1153_vm3, %v3035_v4, -inf }
 0x97b   : > { %3058 = vmax.xlane.f32.xlu1 %v3057_v47  ;;  %v3054_v49 = vsel %vm1153_vm3, %v3034_v34, -inf }
 0x97c   : > { %3055 = vmax.xlane.f32.xlu0 %v3054_v49 }
 0x98c   : > { %5737 = vrot.lane.b32.xlu1 %v6540_v33, %s6147_s30 }
 0x992   : > { %5732 = vrot.lane.b32.xlu0 %v6533_v26, %s6147_s30 }
 0x9f0   : > { %v3041_v52 = vpop.xlane.xlu0 %3040 }
 0x9f1   : > { %v3061_v28 = vsub.f32 %v3029_v56, %v3041_v52  ;;  %v3038_v11 = vpop.xlane.xlu1 %3037 }
 0x9f2   : > { %v3060_v62 = vsub.f32 %v3028_v30, %v3038_v11 }
 0x9f3   : > { %v3070_v0 = vmul.f32 1.442695, %v3061_v28 }
 0x9f4   : > { %v3068_v7 = vmul.f32 1.442695, %v3060_v62 }
 0x9f5   : > { %5871 = vpow2.f32 %v3070_v0 }
 0x9f6   : > { %5873 = vpow2.f32 %v3068_v7 }
 0x9f8   : > { %v3047_v2 = vpop.xlane.xlu1 %3046 }
 0x9f9   : > { %v3063_v21 = vsub.f32 %v3031_v9, %v3047_v2  ;;  %v3044_v23 = vpop.xlane.xlu0 %3043 }
 0x9fa   : > { %v3062_v25 = vsub.f32 %v3030_v17, %v3044_v23 }
 0x9fb   : > { %v3074_v31 = vmul.f32 1.442695, %v3063_v21 }
 0x9fc   : > { %v3072_v54 = vmul.f32 1.442695, %v3062_v25 }
 0x9fd   : > { %5875 = vpow2.f32 %v3074_v31 }
 0x9fe   : > { %5877 = vpow2.f32 %v3072_v54 }
 0x9ff   : > { %v6925_v42 = vpop.eup %5871 }
 0xa00   : > { %v6927_v32 = vpop.eup %5873  ;;  %v3053_v55 = vpop.xlane.xlu1 %3052  ;;  %v3087_v57 = vsel %vm1153_vm3, %v6925_v42, 0.0 }
 0xa01   : > { %v3065_v63 = vsub.f32 %v3033_v18, %v3053_v55  ;;  %v3050_v56 = vpop.xlane.xlu0 %3049  ;;  %3088 = vadd.xlane.f32.xlu1 %v3087_v57  ;;  %v3084_v30 = vsel %vm1153_vm3, %v6927_v32, 0.0 }
 0xa02   : > { %v3064_v10 = vsub.f32 %v3032_v51, %v3050_v56  ;;  %3085 = vadd.xlane.f32.xlu0 %v3084_v30 }
 0xa03   : > { %v3078_v8 = vmul.f32 1.442695, %v3065_v63 }
 0xa04   : > { %v3076_v3 = vmul.f32 1.442695, %v3064_v10 }
 0xa05   : > { %5879 = vpow2.f32 %v3078_v8 }
 0xa06   : > { %5881 = vpow2.f32 %v3076_v3 }
 0xa07   : > { %v6933_v41 = vpop.eup %5875 }
 0xa08   : > { %v6935_v12 = vpop.eup %5877  ;;  %v3059_v1 = vpop.xlane.xlu1 %3058  ;;  %v3093_v9 = vsel %vm1153_vm3, %v6933_v41, 0.0 }
 0xa09   : > { %v3067_v17 = vsub.f32 %v3035_v4, %v3059_v1  ;;  %v3056_v39 = vpop.xlane.xlu0 %3055  ;;  %3094 = vadd.xlane.f32.xlu1 %v3093_v9  ;;  %v3090_v19 = vsel %vm1153_vm3, %v6935_v12, 0.0 }
 0xa0a   : > { %v3066_v24 = vsub.f32 %v3034_v34, %v3056_v39  ;;  %3091 = vadd.xlane.f32.xlu0 %v3090_v19 }
 0xa0b   : > { %v3082_v6 = vmul.f32 1.442695, %v3067_v17 }
 0xa0c   : > { %v3080_v16 = vmul.f32 1.442695, %v3066_v24  ;;  %v5738_v20 = vpop.permute.xlu1 %5737 }
 0xa0d   : > { %5883 = vpow2.f32 %v3082_v6  ;;  %v5740_v18 = vunpack.i.h.bf16 %v5738_v20  ;;  %v5739_v51 = vunpack.i.l.bf16 %v5738_v20  ;;  %v5733_v48 = vpop.permute.xlu0 %5732 }
 0xa0e   : > { %5885 = vpow2.f32 %v3080_v16  ;;  %v5735_v35 = vunpack.i.h.bf16 %v5733_v48  ;;  %v5734_v43 = vunpack.i.l.bf16 %v5733_v48 }
 0xa0f   : > { %v6941_v29 = vpop.eup %5879  ;;  %v5458_v40 = vpack.c.bf16 %v5740_v18, %v5739_v51 }
 0xa10   : > { %v6943_v15 = vpop.eup %5881  ;;  %v5454_v4 = vpack.c.bf16 %v5735_v35, %v5734_v43  ;;  %v3099_v34 = vsel %vm1153_vm3, %v6941_v29, 0.0 }
 0xa11   : > { %3100 = vadd.xlane.f32.xlu1 %v3099_v34  ;;  %5459 = vmatprep.subr.bf16.mxu1 %v5458_v40  ;;  %v3096_v47 = vsel %vm1153_vm3, %v6943_v15, 0.0 }
 0xa12   : > { %5455 = vmatprep.subr.bf16.mxu0 %v5454_v4  ;;  %3097 = vadd.xlane.f32.xlu0 %v3096_v47 }
 0xa13   : > { %5461 = vmatpush3.bf16.msra.mxu1 %v5458_v40  ;;  %5457 = vmatpush3.bf16.msra.mxu0 %v5454_v4 }
 0xa17   : > { %v6949_v49 = vpop.eup %5883 }
 0xa18   : > { %v6951_v52 = vpop.eup %5885  ;;  %v3105_v28 = vsel %vm1153_vm3, %v6949_v49, 0.0 }
 0xa19   : > { %3106 = vadd.xlane.f32.xlu1 %v3105_v28  ;;  %v3102_v11 = vsel %vm1153_vm3, %v6951_v52, 0.0 }
 0xa1a   : > { %3103 = vadd.xlane.f32.xlu0 %v3102_v11 }
 0xa2a   : > { %5742 = vrot.lane.b32.xlu1 %v6545_v38, %s6147_s30 }
 0xa2e   : > { %5752 = vrot.lane.b32.xlu1 %v6533_v26, %s6148_s11 }
 0xa30   : > { %5747 = vrot.lane.b32.xlu0 %v6554_v45, %s6147_s30 }
 0xa32   : > { %3613 = vrot.lane.b32.xlu1 %v6535_v27, %s6149_s29 }
 0xa34   : > { %5757 = vrot.lane.b32.xlu0 %v6540_v33, %s6148_s11 }
 0xa36   : > { %5762 = vrot.lane.b32.xlu1 %v6545_v38, %s6148_s11 }
 0xa38   : > { %3615 = vrot.lane.b32.xlu0 %v6571_v58, %s6149_s29 }
 0xa3a   : > { %3704 = vrot.lane.b32.xlu1 %v6573_v59, %s6149_s29 }
 0xa3c   : > { %5767 = vrot.lane.b32.xlu0 %v6554_v45, %s6148_s11 }
 0xa3e   : > { %3795 = vrot.lane.b32.xlu1 %v6543_v37, %s6149_s29 }
 0xa40   : > { %3706 = vrot.lane.b32.xlu0 %v6585_v60, %s6149_s29 }
 0xa42   : > { %3886 = vrot.lane.b32.xlu1 %v6589_v61, %s6149_s29 }
 0xa44   : > { %3797 = vrot.lane.b32.xlu0 %v6587_v22, %s6149_s29 }
 0xa48   : > { %3888 = vrot.lane.b32.xlu0 %v6604_v14, %s6149_s29  ;;  %s7190_s29 = sld [smem:[#allocation18_spill]] }
 0xa4e   : > { %s7104_s26 = scalar_lea.hbm %s7190_s29, %s4865_s25 }
 0xa8e   : > { %v3089_v27 = vpop.xlane.xlu1 %3088 }
 0xa8f   : > { %5887 = vrcp.f32 %v3089_v27  ;;  %v3086_v62 = vpop.xlane.xlu0 %3085 }
 0xa90   : > { %5889 = vrcp.f32 %v3086_v62 }
 0xa96   : > { %v3095_v0 = vpop.xlane.xlu1 %3094 }
 0xa97   : > { %5891 = vrcp.f32 %v3095_v0  ;;  %v3092_v58 = vpop.xlane.xlu0 %3091 }
 0xa98   : > { %5893 = vrcp.f32 %v3092_v58 }
 0xa99   : > { %v5888_v59 = vpop.eup %5887 }
 0xa9a   : > { %v5890_v7 = vpop.eup %5889  ;;  %v3111_v60 = vmul.f32 %v5888_v59, %v6925_v42 }
 0xa9b   : > { %v3109_v37 = vmul.f32 %v5890_v7, %v6927_v32 }
 0xa9d   : > { %5234 = vmatprep.mubr.msk.f32.mxu0 %vm1153_vm3, %v3109_v37 }
 0xa9e   : > { %5235 = vmatmul.mubr.msk.f32.vlgmr.msra.gmra.mrb[30].mxu0 %vm1153_vm3, %v3111_v60  ;;  %v3101_v14 = vpop.xlane.xlu1 %3100 }
 0xa9f   : > { %v3098_v22 = vpop.xlane.xlu0 %3097 }
 0xaa0   : > { %5895 = vrcp.f32 %v3098_v22 }
 0xaa1   : > { %v5892_v61 = vpop.eup %5891  ;;  %5897 = vrcp.f32 %v3101_v14 }
 0xaa2   : > { %v5894_v2 = vpop.eup %5893  ;;  %v3115_v23 = vmul.f32 %v5892_v61, %v6933_v41 }
 0xaa3   : > { %v3113_v21 = vmul.f32 %v5894_v2, %v6935_v12  ;;  %v3472_v12 = vld [vmem:[#allocation8 + $0x10] sm:$0xff] }
 0xaa5   : > { %5241 = vmatprep.mubr.msk.f32.mxu1 %vm1153_vm3, %v3113_v21  ;;  %v4824_v21 = vld [vmem:[%s7158_s6 + $0x30] sm:$0xff] }
 0xaa6   : > { %v3107_v25 = vpop.xlane.xlu1 %3106  ;;  %5242 = vmatmul.mubr.msk.f32.vlgmr.msra.gmra.mrb[32].mxu1 %vm1153_vm3, %v3115_v23 }
 0xaa7   : > { %5899 = vrcp.f32 %v3107_v25  ;;  %v3104_v31 = vpop.xlane.xlu0 %3103 }
 0xaa8   : > { %5901 = vrcp.f32 %v3104_v31 }
 0xaaa   : > { %v5896_v54 = vpop.eup %5895  ;;  %v5743_v42 = vpop.permute.xlu1 %5742 }
 0xaab   : > { %v5745_v32 = vunpack.i.h.bf16 %v5743_v42  ;;  %v5744_v55 = vunpack.i.l.bf16 %v5743_v42  ;;  %v5748_v57 = vpop.permute.xlu0 %5747  ;;  %v3117_v63 = vmul.f32 %v5896_v54, %v6943_v15  ;;  %v5898_v8 = vpop.eup %5897  ;;  %v5935_v42 = vld [vmem:[#allocation7 + $0x8] sm:$0xff] }
 0xaac   : > { %v5750_v56 = vunpack.i.h.bf16 %v5748_v57  ;;  %v5749_v30 = vunpack.i.l.bf16 %v5748_v57  ;;  %v3119_v19 = vmul.f32 %v5898_v8, %v6941_v29 }
 0xaad   : > { %v5462_v10 = vpack.c.bf16 %v5745_v32, %v5744_v55  ;;  %5248 = vmatprep.mubr.msk.f32.mxu0 %vm1153_vm3, %v3117_v63  ;;  %v5936_v55 = vld [vmem:[#allocation7] sm:$0xff] }
 0xaae   : > { %v5466_v3 = vpack.c.bf16 %v5750_v56, %v5749_v30  ;;  %v5753_v41 = vpop.permute.xlu1 %5752 }
 0xaaf   : > { %v5755_v1 = vunpack.i.h.bf16 %v5753_v41  ;;  %v5754_v9 = vunpack.i.l.bf16 %v5753_v41  ;;  %v5758_v17 = vpop.permute.xlu0 %5757  ;;  %5463 = vmatprep.subr.bf16.mxu0 %v5462_v10  ;;  %v5937_v41 = vld [vmem:[#allocation7 + $0x18] sm:$0xff] }
 0xab0   : > { %5465 = vmatpush3.bf16.msra.mxu0 %v5462_v10  ;;  %5467 = vmatprep.subr.bf16.mxu1 %v5466_v3  ;;  %v5760_v48 = vunpack.i.h.bf16 %v5758_v17  ;;  %v5759_v35 = vunpack.i.l.bf16 %v5758_v17 }
 0xab1   : > { %v5900_v39 = vpop.eup %5899  ;;  %v5470_v24 = vpack.c.bf16 %v5755_v1, %v5754_v9  ;;  %5469 = vmatpush3.bf16.msra.mxu1 %v5466_v3  ;;  %5258 = vmatprep.subr.mxu0 %v3472_v12  ;;  %v5938_v1 = vld [vmem:[#allocation7 + $0x10] sm:$0xff] }
 0xab2   : > { %v5902_v6 = vpop.eup %5901  ;;  %v3614_v16 = vpop.permute.xlu1 %3613  ;;  %v3123_v18 = vmul.f32 %v5900_v39, %v6949_v49  ;;  %v5476_v15 = vpack.c.bf16 %v5760_v48, %v5759_v35 }
 0xab3   : > { %5249 = vmatmul.mubr.msk.f32.vlgmr.msra.gmra.mrb[32].mxu0 %vm1153_vm3, %v3119_v19  ;;  %5472 = vmatprep.subr.msk.bf16.mxu1 %vm6561_vm2, %v5470_v24  ;;  %v3121_v20 = vmul.f32 %v5902_v6, %v6951_v52  ;;  %v3616_v51 = vpop.permute.xlu0 %3615 }
 0xab4   : > { %5259 = vmatpush3.msra.mxu0 %v3472_v12 }
 0xab5   : > { %5255 = vmatprep.mubr.msk.f32.mxu1 %vm1153_vm3, %v3121_v20 }
 0xab6   : > { %v5763_v43 = vpop.permute.xlu1 %5762  ;;  %5256 = vmatmul.mubr.msk.f32.vlgmr.msra.gmra.mrb[34].mxu1 %vm1153_vm3, %v3123_v18 }
 0xab7   : > { %v5765_v29 = vunpack.i.h.bf16 %v5763_v43  ;;  %v5764_v40 = vunpack.i.l.bf16 %v5763_v43  ;;  %5276 = vmatprep.mubr.msk.f32.mxu1 %vm786_vm1, %v3614_v16  ;;  %v5768_v34 = vpop.permute.xlu0 %5767 }
 0xab8   : > { %v5770_v47 = vunpack.i.h.bf16 %v5768_v34  ;;  %v5769_v49 = vunpack.i.l.bf16 %v5768_v34 }
 0xab9   : > { %v5482_v4 = vpack.c.bf16 %v5765_v29, %v5764_v40 }
 0xaba   : > { %5475 = vmatpush3.bf16.xpose.msk.msra.mxu1 %vm6561_vm2, %v5470_v24  ;;  %v3705_v52 = vpop.permute.xlu1 %3704  ;;  %v5488_v28 = vpack.c.bf16 %v5770_v47, %v5769_v49 }
 0xabb   : > { %5478 = vmatprep.subr.msk.bf16.mxu1 %vm6561_vm2, %v5476_v15  ;;  %5484 = vmatprep.subr.msk.bf16.mxu0 %vm6561_vm2, %v5482_v4  ;;  %v3707_v27 = vpop.permute.xlu0 %3706 }
 0xabe   : > { %v3796_v11 = vpop.permute.xlu1 %3795 }
 0xabf   : > { %v3798_v0 = vpop.permute.xlu0 %3797 }
 0xac1   : > { %5277 = vmatmul.mubr.msk.f32.vlgmr.msra.gmra.mrb[36].mxu1 %vm786_vm1, %v3616_v51 }
 0xac2   : > { %5481 = vmatpush3.bf16.xpose.msk.msra.mxu1 %vm6561_vm2, %v5476_v15  ;;  %5283 = vmatprep.mubr.msk.f32.mxu1 %vm786_vm1, %v3705_v52  ;;  %v3887_v62 = vpop.permute.xlu1 %3886 }
 0xac3   : > { %5490 = vmatprep.subr.msk.bf16.mxu1 %vm6561_vm2, %v5488_v28  ;;  %v3889_v58 = vpop.permute.xlu0 %3888 }
 0xac9   : > { %5284 = vmatmul.mubr.msk.f32.vlgmr.msra.gmra.mrb[38].mxu1 %vm786_vm1, %v3707_v27  ;;  %v5939_v27 = vld [vmem:[#allocation7 + $0x28] sm:$0xff] }
 0xaca   : > { %5493 = vmatpush3.bf16.xpose.msk.msra.mxu1 %vm6561_vm2, %v5488_v28  ;;  %5297 = vmatprep.mubr.msk.f32.mxu1 %vm786_vm1, %v3887_v62 }
 0xad1   : > { %5298 = vmatmul.mubr.msk.f32.vlgmr.msra.gmra.mrb[40].mxu1 %vm786_vm1, %v3889_v58 }
 0xb71   : > { %v5236_v59 = vpop.f32.mrb[30].mxu0 }
 0xb72   : > { %v3202_v7 = vpop.f32.mrb[31].mxu0 }
 0xb73   : > { %5260 = vmatprep.mubr.msk.f32.mxu0 %vm786_vm1, %v3202_v7 }
 0xb74   : > { %5261 = vmatmul.mubr.msk.f32.vlgmr.msra.gmra.mrb[22].mxu0 %vm786_vm1, %v5236_v59  ;;  %v5941_v59 = vld [vmem:[#allocation7 + $0x38] sm:$0xff] }
 0xb75   : > { %5487 = vmatpush3.bf16.xpose.msk.msra.mxu0 %vm6561_vm2, %v5482_v4 }
 0xb79   : > { %v5243_v37 = vpop.f32.mrb[32].mxu1 }
 0xb7a   : > { %v3289_v60 = vpop.f32.mrb[33].mxu1 }
 0xb7b   : > { %5263 = vmatprep.mubr.msk.f32.mxu0 %vm786_vm1, %v3289_v60  ;;  %v5942_v60 = vld [vmem:[#allocation7 + $0x30] sm:$0xff] }
 0xb7c   : > { %5264 = vmatmul.mubr.msk.f32.gmra.mrb[24].mxu0 %vm786_vm1, %v5243_v37 }
 0xb86   : > { %v5250_v22 = vpop.f32.mrb[32].mxu0 }
 0xb87   : > { %v3376_v61 = vpop.f32.mrb[33].mxu0 }
 0xb88   : > { %5266 = vmatprep.mubr.msk.f32.mxu0 %vm786_vm1, %v3376_v61 }
 0xb89   : > { %v5257_v14 = vpop.f32.mrb[34].mxu1  ;;  %5267 = vmatmul.mubr.msk.f32.gmra.mrb[26].mxu0 %vm786_vm1, %v5250_v22 }
 0xb8a   : > { %v3463_v2 = vpop.f32.mrb[35].mxu1 }
 0xb8b   : > { %5269 = vmatprep.mubr.msk.f32.mxu0 %vm786_vm1, %v3463_v2 }
 0xb8d   : > { %5270 = vmatmul.mubr.msk.f32.gmra.mrb[28].mxu0 %vm786_vm1, %v5257_v14 }
 0xb8e   : > { %5290 = vmatprep.mubr.msk.f32.mxu0 %vm786_vm1, %v3796_v11 }
 0xb91   : > { %5291 = vmatmul.mubr.msk.f32.vlgmr.msra.gmra.mrb[34].mxu0 %vm786_vm1, %v3798_v0  ;;  %v5940_v0 = vld [vmem:[#allocation7 + $0x20] sm:$0xff] }
 0xb94   : > { %v5278_v23 = vpop.f32.mrb[36].mxu1 }
 0xb95   : > { %v3701_v25 = vadd.f32 %v5278_v23, %v4825_v50  ;;  %v3695_v31 = vpop.f32.mrb[37].mxu1 }
 0xb96   : > { %v3696_v54 = vadd.f32 %v4824_v21, %v3695_v31 }
 0xb97   : > { %v3978_v32 = vadd.f32 %v5935_v42, %v3701_v25 }
 0xb98   : > { %v3977_v57 = vadd.f32 %v5936_v55, %v3696_v54 }
 0xb99   : > { %v3988_v63 = vsel %vm1153_vm3, %v3978_v32, -inf }
 0xb9a   : > { %3989 = vmax.xlane.f32.xlu0 %v3988_v63  ;;  %v3985_v56 = vsel %vm1153_vm3, %v3977_v57, -inf }
 0xb9b   : > { %3986 = vmax.xlane.f32.xlu1 %v3985_v56 }
 0xb9c   : > { %v5285_v30 = vpop.f32.mrb[38].mxu1 }
 0xb9d   : > { %v3792_v10 = vadd.f32 %v5285_v30, %v4825_v50  ;;  %v3786_v8 = vpop.f32.mrb[39].mxu1 }
 0xb9e   : > { %v3787_v3 = vadd.f32 %v4824_v21, %v3786_v8 }
 0xb9f   : > { %v3980_v12 = vadd.f32 %v5937_v41, %v3792_v10 }
 0xba0   : > { %v3979_v9 = vadd.f32 %v5938_v1, %v3787_v3 }
 0xba1   : > { %v3994_v17 = vsel %vm1153_vm3, %v3980_v12, -inf }
 0xba2   : > { %3995 = vmax.xlane.f32.xlu1 %v3994_v17  ;;  %v3991_v39 = vsel %vm1153_vm3, %v3979_v9, -inf }
 0xba3   : > { %3992 = vmax.xlane.f32.xlu0 %v3991_v39 }
 0xba4   : > { %v5299_v19 = vpop.f32.mrb[40].mxu1 }
 0xba5   : > { %v3968_v24 = vpop.f32.mrb[41].mxu1  ;;  %v3974_v34 = vadd.f32 %v5299_v19, %v4825_v50 }
 0xba6   : > { %v3969_v28 = vadd.f32 %v4824_v21, %v3968_v24 }
 0xba7   : > { %v3984_v7 = vadd.f32 %v5941_v59, %v3974_v34 }
 0xba8   : > { %v3983_v22 = vadd.f32 %v5942_v60, %v3969_v28 }
 0xba9   : > { %v4006_v14 = vsel %vm1153_vm3, %v3984_v7, -inf }
 0xc27   : > { %v3990_v6 = vpop.xlane.xlu0 %3989 }
 0xc28   : > { %v3987_v16 = vpop.xlane.xlu1 %3986  ;;  %v4010_v20 = vsub.f32 %v3978_v32, %v3990_v6 }
 0xc29   : > { %v4009_v18 = vsub.f32 %v3977_v57, %v3987_v16 }
 0xc2a   : > { %v4019_v35 = vmul.f32 1.442695, %v4010_v20 }
 0xc2b   : > { %v4017_v29 = vmul.f32 1.442695, %v4009_v18 }
 0xc2c   : > { %5903 = vpow2.f32 %v4019_v35 }
 0xc2d   : > { %5905 = vpow2.f32 %v4017_v29 }
 0xc2f   : > { %v3996_v51 = vpop.xlane.xlu1 %3995 }
 0xc30   : > { %v3993_v48 = vpop.xlane.xlu0 %3992  ;;  %v4012_v43 = vsub.f32 %v3980_v12, %v3996_v51 }
 0xc31   : > { %v4011_v40 = vsub.f32 %v3979_v9, %v3993_v48 }
 0xc32   : > { %v4023_v15 = vmul.f32 1.442695, %v4012_v43 }
 0xc33   : > { %v4021_v47 = vmul.f32 1.442695, %v4011_v40 }
 0xc34   : > { %5907 = vpow2.f32 %v4023_v15 }
 0xc35   : > { %5909 = vpow2.f32 %v4021_v47 }
 0xc36   : > { %v7034_v2 = vpop.eup %5903 }
 0xc37   : > { %v4036_v23 = vsel %vm1153_vm3, %v7034_v2, 0.0 }
 0xc64   : > { %v5292_v4 = vpop.f32.mrb[34].mxu0 }
 0xc65   : > { %v3883_v49 = vadd.f32 %v5292_v4, %v4825_v50  ;;  %v3877_v52 = vpop.f32.mrb[35].mxu0  ;;  %v4003_v50 = vsel %vm1153_vm3, %v3983_v22, -inf }
 0xc66   : > { %v3878_v11 = vadd.f32 %v4824_v21, %v3877_v52  ;;  %v5906_v21 = vpop.eup %5905 }
 0xc67   : > { %v3982_v62 = vadd.f32 %v5939_v27, %v3883_v49  ;;  %v7039_v25 = vpop.eup %5907  ;;  %v4033_v31 = vsel %vm1153_vm3, %v5906_v21, 0.0 }
 0xc68   : > { %v3981_v58 = vadd.f32 %v5940_v0, %v3878_v11  ;;  %v7042_v54 = vpop.eup %5909  ;;  %v4042_v42 = vsel %vm1153_vm3, %v7039_v25, 0.0 }
 0xc69   : > { %v4000_v37 = vsel %vm1153_vm3, %v3982_v62, -inf  ;;  %v4039_v32 = vsel %vm1153_vm3, %v7042_v54, 0.0 }
 0xc6a   : > { %4001 = vmax.xlane.f32.xlu1 %v4000_v37  ;;  %v3997_v61 = vsel %vm1153_vm3, %v3981_v58, -inf }
 0xc6b   : > { %3998 = vmax.xlane.f32.xlu0 %v3997_v61 }
 0xc6e   : > { %4007 = vmax.xlane.f32.xlu1 %v4006_v14 }
 0xc6f   : > { %4004 = vmax.xlane.f32.xlu0 %v4003_v50 }
 0xc72   : > { %4037 = vadd.xlane.f32.xlu1 %v4036_v23 }
 0xc73   : > { %4034 = vadd.xlane.f32.xlu0 %v4033_v31 }
 0xc76   : > { %4043 = vadd.xlane.f32.xlu1 %v4042_v42 }
 0xc77   : > { %4040 = vadd.xlane.f32.xlu0 %v4039_v32 }
 0xcf7   : > { %v4002_v55 = vpop.xlane.xlu1 %4001 }
 0xcf8   : > { %v3999_v57 = vpop.xlane.xlu0 %3998  ;;  %v4014_v24 = vsub.f32 %v3982_v62, %v4002_v55 }
 0xcf9   : > { %v4013_v6 = vsub.f32 %v3981_v58, %v3999_v57 }
 0xcfa   : > { %v4027_v16 = vmul.f32 1.442695, %v4014_v24 }
 0xcfb   : > { %v4008_v63 = vpop.xlane.xlu1 %4007  ;;  %v4025_v20 = vmul.f32 1.442695, %v4013_v6 }
 0xcfc   : > { %v4016_v56 = vsub.f32 %v3984_v7, %v4008_v63  ;;  %v4005_v30 = vpop.xlane.xlu0 %4004  ;;  %v4421_v63 = vld [vmem:[#allocation8 + $0x18] sm:$0xff] }
 0xcfd   : > { %v4015_v10 = vsub.f32 %v3983_v22, %v4005_v30 }
 0xcfe   : > { %v4031_v8 = vmul.f32 1.442695, %v4016_v56 }
 0xcff   : > { %v4029_v3 = vmul.f32 1.442695, %v4015_v10 }
 0xd00   : > { %5911 = vpow2.f32 %v4031_v8  ;;  %v4035_v41 = vpop.xlane.xlu0 %4034 }
 0xd01   : > { %5913 = vpow2.f32 %v4029_v3 }
 0xd02   : > { %5915 = vrcp.f32 %v4035_v41 }
 0xd03   : > { %5917 = vpow2.f32 %v4027_v16 }
 0xd04   : > { %5919 = vpow2.f32 %v4025_v20  ;;  %v4041_v43 = vpop.xlane.xlu0 %4040 }
 0xd0a   : > { %v7048_v12 = vpop.eup %5911 }
 0xd0b   : > { %v5914_v1 = vpop.eup %5913  ;;  %v4054_v9 = vsel %vm1153_vm3, %v7048_v12, 0.0 }
 0xd0c   : > { %4055 = vadd.xlane.f32.xlu1 %v4054_v9  ;;  %v4051_v17 = vsel %vm1153_vm3, %v5914_v1, 0.0  ;;  %v5916_v39 = vpop.eup %5915  ;;  %v4858_v9 = vld [vmem:[%s7189_s9] ss:$0 sm:$0xff] }
 0xd0d   : > { %4052 = vadd.xlane.f32.xlu0 %v4051_v17  ;;  %v4058_v19 = vmul.f32 %v5916_v39, %v5906_v21  ;;  %v7056_v18 = vpop.eup %5917 }
 0xd0e   : > { %v5920_v51 = vpop.eup %5919  ;;  %v4048_v48 = vsel %vm1153_vm3, %v7056_v18, 0.0 }
 0xd0f   : > { %5304 = vmatprep.mubr.msk.f32.mxu0 %vm1153_vm3, %v4058_v19  ;;  %v4045_v35 = vsel %vm1153_vm3, %v5920_v51, 0.0 }
 0xd1d   : > { %5777 = vrot.lane.b32.xlu1 %v6540_v33, %s6150_s28 }
 0xd23   : > { %5772 = vrot.lane.b32.xlu0 %v6533_v26, %s6150_s28  ;;  %v4038_v26 = vpop.xlane.xlu1 %4037 }
 0xd24   : > { %5921 = vrcp.f32 %v4038_v26 }
 0xd25   : > { %5923 = vrcp.f32 %v4041_v43 }
 0xd27   : > { %v4044_v33 = vpop.xlane.xlu1 %4043 }
 0xd28   : > { %5925 = vrcp.f32 %v4044_v33 }
 0xd2e   : > { %v5922_v11 = vpop.eup %5921 }
 0xd41   : > { %4049 = vadd.xlane.f32.xlu1 %v4048_v48 }
 0xd42   : > { %4046 = vadd.xlane.f32.xlu0 %v4045_v35 }
 0xd52   : > { %5782 = vrot.lane.b32.xlu1 %v6545_v38, %s6150_s28  ;;  %v5924_v38 = vpop.eup %5923 }
 0xd53   : > { %v5926_v62 = vpop.eup %5925  ;;  %v4062_v0 = vmul.f32 %v5924_v38, %v7042_v54 }
 0xd54   : > { %v4064_v59 = vmul.f32 %v5926_v62, %v7039_v25 }
 0xd58   : > { %5787 = vrot.lane.b32.xlu0 %v6554_v45, %s6150_s28  ;;  %v4060_v45 = vmul.f32 %v5922_v11, %v7034_v2  ;;  %s6063_s28 = scalar_lea.vmem %s6062_s18, 2048 }
 0xd59   : > { %p6065_p1 = scmp.lt.s32.totalorder %s6063_s28, %s6057_s24 }
 0xd5b   : > { %p6066_p2 = por %p6065_p1, %p6064_p12 }
 0xd5d   : > { %p6067_p4 = pnand %p6066_p2, %p6060_p7 }
 0xd99   : > { %v4056_v29 = vpop.xlane.xlu1 %4055 }
 0xd9a   : > { %v4053_v40 = vpop.xlane.xlu0 %4052 }
 0xd9b   : > { %5927 = vrcp.f32 %v4053_v40 }
 0xd9c   : > { %5929 = vrcp.f32 %v4056_v29 }
 0xd9d   : > { %v5778_v15 = vpop.permute.xlu1 %5777 }
 0xd9e   : > { %v5773_v4 = vpop.permute.xlu0 %5772  ;;  %v5780_v34 = vunpack.i.h.bf16 %v5778_v15  ;;  %v5779_v47 = vunpack.i.l.bf16 %v5778_v15 }
 0xd9f   : > { %v5775_v49 = vunpack.i.h.bf16 %v5773_v4  ;;  %v5774_v52 = vunpack.i.l.bf16 %v5773_v4 }
 0xda0   : > { %v5498_v27 = vpack.c.bf16 %v5780_v34, %v5779_v47 }
 0xda1   : > { %v5494_v28 = vpack.c.bf16 %v5775_v49, %v5774_v52 }
 0xda3   : > { %5495 = vmatprep.subr.bf16.mxu0 %v5494_v28 }
 0xda4   : > { %5497 = vmatpush3.bf16.msra.mxu0 %v5494_v28 }
 0xda5   : > { %5499 = vmatprep.subr.bf16.mxu0 %v5498_v27  ;;  %v5928_v58 = vpop.eup %5927 }
 0xda6   : > { %v4070_v7 = vmul.f32 %v5928_v58, %v5914_v1  ;;  %v5930_v54 = vpop.eup %5929 }
 0xda7   : > { %5305 = vmatmul.mubr.msk.f32.vlgmr.msra.gmra.mrb[36].mxu0 %vm1153_vm3, %v4060_v45  ;;  %v4072_v32 = vmul.f32 %v5930_v54, %v7048_v12 }
 0xda8   : > { %5501 = vmatpush3.bf16.msra.mxu0 %v5498_v27  ;;  %5311 = vmatprep.mubr.msk.f32.mxu0 %vm1153_vm3, %v4062_v0 }
 0xdab   : > { %5312 = vmatmul.mubr.msk.f32.vlgmr.msra.gmra.mrb[38].mxu0 %vm1153_vm3, %v4064_v59 }
 0xdac   : > { %5325 = vmatprep.mubr.msk.f32.mxu0 %vm1153_vm3, %v4070_v7 }
 0xdce   : > { %v4050_v37 = vpop.xlane.xlu1 %4049 }
 0xdcf   : > { %5931 = vrcp.f32 %v4050_v37  ;;  %v4047_v60 = vpop.xlane.xlu0 %4046 }
 0xdd0   : > { %5933 = vrcp.f32 %v4047_v60 }
 0xdd2   : > { %v5783_v22 = vpop.permute.xlu1 %5782 }
 0xdd3   : > { %v5785_v61 = vunpack.i.h.bf16 %v5783_v22  ;;  %v5784_v14 = vunpack.i.l.bf16 %v5783_v22  ;;  %v5788_v2 = vpop.permute.xlu0 %5787 }
 0xdd4   : > { %v5790_v50 = vunpack.i.h.bf16 %v5788_v2  ;;  %v5789_v21 = vunpack.i.l.bf16 %v5788_v2 }
 0xdd5   : > { %v5502_v23 = vpack.c.bf16 %v5785_v61, %v5784_v14 }
 0xdd6   : > { %v5506_v31 = vpack.c.bf16 %v5790_v50, %v5789_v21 }
 0xdd7   : > { %5503 = vmatprep.subr.bf16.mxu1 %v5502_v23 }
 0xdd8   : > { %5505 = vmatpush3.bf16.msra.mxu1 %v5502_v23  ;;  %5507 = vmatprep.subr.bf16.mxu0 %v5506_v31 }
 0xdd9   : > { %v5932_v25 = vpop.eup %5931  ;;  %5509 = vmatpush3.bf16.msra.mxu0 %v5506_v31 }
 0xdda   : > { %v5934_v42 = vpop.eup %5933  ;;  %v4068_v57 = vmul.f32 %v5932_v25, %v7056_v18  ;;  %5328 = vmatprep.subr.mxu0 %v4421_v63 }
 0xddb   : > { %v4066_v55 = vmul.f32 %v5934_v42, %v5920_v51 }
 0xddc   : > { %5326 = vmatmul.mubr.msk.f32.vlgmr.msra.gmra.mrb[40].mxu0 %vm1153_vm3, %v4072_v32 }
 0xddd   : > { %5318 = vmatprep.mubr.msk.f32.mxu1 %vm1153_vm3, %v4066_v55  ;;  %5329 = vmatpush3.msra.mxu0 %v4421_v63 }
 0xdde   : > { %5319 = vmatmul.mubr.msk.f32.vlgmr.msra.gmra.mrb[42].mxu1 %vm1153_vm3, %v4068_v57 }
 0xe7a   : > { %v5306_v56 = vpop.f32.mrb[36].mxu0 }
 0xe7b   : > { %v4151_v30 = vpop.f32.mrb[37].mxu0 }
 0xe7c   : > { %5330 = vmatprep.mubr.msk.f32.mxu0 %vm786_vm1, %v4151_v30 }
 0xe7d   : > { %5331 = vmatmul.mubr.msk.f32.vlgmr.msra.gmra.mrb[22].mxu0 %vm786_vm1, %v5306_v56 }
 0xe7e   : > { %v5313_v10 = vpop.f32.mrb[38].mxu0 }
 0xe7f   : > { %v4238_v8 = vpop.f32.mrb[39].mxu0 }
 0xe80   : > { %5333 = vmatprep.mubr.msk.f32.mxu0 %vm786_vm1, %v4238_v8 }
 0xe81   : > { %5334 = vmatmul.mubr.msk.f32.gmra.mrb[24].mxu0 %vm786_vm1, %v5313_v10 }
 0xeaf   : > { %v5327_v3 = vpop.f32.mrb[40].mxu0 }
 0xeb0   : > { %v4412_v41 = vpop.f32.mrb[41].mxu0 }
 0xeb1   : > { %v5320_v12 = vpop.f32.mrb[42].mxu1 }
 0xeb2   : > { %v4325_v1 = vpop.f32.mrb[43].mxu1 }
 0xeb3   : > { %5336 = vmatprep.mubr.msk.f32.mxu0 %vm786_vm1, %v4325_v1 }
 0xeb4   : > { %5337 = vmatmul.mubr.msk.f32.gmra.mrb[26].mxu0 %vm786_vm1, %v5320_v12 }
 0xeb5   : > { %5339 = vmatprep.mubr.msk.f32.mxu0 %vm786_vm1, %v4412_v41 }
 0xeb8   : > { %5340 = vmatmul.mubr.msk.f32.gmra.mrb[28].mxu0 %vm786_vm1, %v5327_v3 }
 0xf50   : > { %v5332_v17 = vpop.f32.mrb[22].mxu0 }
 0xf51   : > { %v4567_v39 = vadd.f32 %v5332_v17, %v4858_v9  ;;  %v4512_v19 = vpop.f32.mrb[23].mxu0 }
 0xf52   : > { %v4566_v24 = vadd.f32 %v4858_v9, %v4512_v19 }
 0xf53   : > { %4575 = vst.msk [vmem:[%s421_s19 + $0x8] sm:$0xff] %vm430_vm0, %v4567_v39 }
 0xf54   : > { %4574 = vst.msk [vmem:[%s421_s19] sm:$0xff] %vm430_vm0, %v4566_v24  ;;  %v5335_v6 = vpop.f32.mrb[24].mxu0 }
 0xf55   : > { %v5512_v16 = vadd.f32 %v5335_v6, %v6887_v5  ;;  %v4522_v20 = vpop.f32.mrb[25].mxu0 }
 0xf56   : > { %v5513_v18 = vadd.f32 %v4522_v20, %v6889_v36 }
 0xf57   : > { %v4569_v51 = vadd.f32 %v5512_v16, %v4858_v9 }
 0xf58   : > { %v4568_v48 = vadd.f32 %v5513_v18, %v4858_v9 }
 0xf59   : > { %4577 = vst.msk [vmem:[%s421_s19 + $0x18] sm:$0xff] %vm430_vm0, %v4569_v51 }
 0xf5a   : > { %4576 = vst.msk [vmem:[%s421_s19 + $0x10] sm:$0xff] %vm430_vm0, %v4568_v48 }
 0xf87   : > { %v5338_v35 = vpop.f32.mrb[26].mxu0 }
 0xf88   : > { %v5514_v26 = vadd.f32 %v5338_v35, %v6891_v13  ;;  %v4532_v33 = vpop.f32.mrb[27].mxu0 }
 0xf89   : > { %v5515_v43 = vadd.f32 %v4532_v33, %v6893_v53 }
 0xf8a   : > { %v4571_v29 = vadd.f32 %v5514_v26, %v4858_v9 }
 0xf8b   : > { %v4570_v40 = vadd.f32 %v5515_v43, %v4858_v9  ;;  %v5341_v15 = vpop.f32.mrb[28].mxu0 }
 0xf8c   : > { %4579 = vst.msk [vmem:[%s421_s19 + $0x28] sm:$0xff] %vm430_vm0, %v4571_v29  ;;  %v5516_v5 = vadd.f32 %v5341_v15, %v6895_v46  ;;  %v4542_v36 = vpop.f32.mrb[29].mxu0 }
 0xf8d   : > { %4578 = vst.msk [vmem:[%s421_s19 + $0x20] sm:$0xff] %vm430_vm0, %v4570_v40  ;;  %v5517_v4 = vadd.f32 %v4542_v36, %v6897_v44 }
 0xf8e   : > { %v4573_v13 = vadd.f32 %v5516_v5, %v4858_v9 }
 0xf8f   : > { %v4572_v53 = vadd.f32 %v5517_v4, %v4858_v9 }
 0xf90   : > { %4581 = vst.msk [vmem:[%s421_s19 + $0x38] sm:$0xff] %vm430_vm0, %v4573_v13 }
 0xf91   : > { %4580 = vst.msk [vmem:[%s421_s19 + $0x30] sm:$0xff] %vm430_vm0, %v4572_v53 }
 0xf92   : > { %6070 = shalt.err (!%p6067_p4)
}
 0xf93   : > { %s6071_s27 = scalar_lea.hbm %s7104_s26, 1024  ;;  %s6075_s19 = scalar_lea.hbm %s7190_s29, 2048 }
 0xf94   : > { %p6072_p9 = scmp.ne.s32.totalorder %s7104_s26, %s6071_s27  ;;  %p6076_p8 = scmp.lt.u32.totalorder %s7104_s26, %s7190_s29 }
 0xf95   : > { %p6077_p13 = scmp.lt.u32.totalorder %s6075_s19, %s6071_s27  ;;  %p6079_p10 = scmp.lt.u32.totalorder %s6071_s27, %s7104_s26 }
 0xf96   : > { %p6073_p0 = pnand %p6072_p9, %p6363_p5 }
 0xf97   : > { %p6078_p6 = por %p6077_p13, %p6076_p8 }
 0xf98   : > { %p6074_p11 = pneg %p6073_p0 }
 0xf99   : > { %p6080_p3 = por %p6079_p10, %p6078_p6 }
 0xf9b   : > { %p6081_p7 = pnand %p6080_p3, %p6074_p11 }
 0xf9d   : > { %6084 = shalt.err (!%p6081_p7)
}
 0xf9e   : > { %s6152_s11 = smov 128   ;;  %s6153_s24 = smov 8  }
 0xf9f   : > { %5550 = dma.vmem_to_hbm [thread:$0]  (%p6363_p5), %s7106_s21, 1024, %s7104_s26, %s4583_s17, %s6152_s11, %s6152_s11, %s6153_s24  }
 0xfa0 PF: > { %s7191_s12 = sld [smem:[#allocation15_spill]]  ;;  %s7192_s18 = sld [smem:[#allocation16_spill]] }
 0xfa1   : > { %p7194_p1 = scmp.ge.s32.totalorder %s6131_s16, 2 }
 0xfa6   : > { %s4611_s28 = sand.u32 1, %s7191_s12   ;;  %p7193_p12 = scmp.ne.s32.totalorder %s7192_s18, 0 }
 0xfa7   : > { %s4612_s27 = scalar_lea.sflag [#allocation4], %s4611_s28 }
 0xfa8   : > { %p5567_p2 = pnand %p7194_p1, %p7193_p12 }
 0xfaa   : > { %6114 = dma.done.wait (!%p5567_p2), %s4612_s27, 1024  }
 0xfab   : > { %6116 = vsyncadd (!%p5567_p2), %s4612_s27, 4294966272  ;;  %s7195_s23 = smov %s6359_s13  ;;  %p25_p4 = scmp.ge.s32.totalorder %s6349_s22, 4  }
 0xfac   : > { %s7196_s13 = smov %s6123_s14  ;;  %s7197_s14 = smov %s6127_s15 }
 0xfad   : > { %s7198_s15 = smov %s7195_s23  ;;  %s7199_s16 = smov %s6349_s22 }
 0xfae   :  { %27 = sbr.rel (!%p25_p4) target bundleno = 10 (0xa), region = 120 }
 0xfb5   :  { %4617 = vsyncpa [#allocation3], 1 }
 0xfb6   :  { %4619 = vsyncpa [#allocation3 + $0x1], 1 }
 0xfb7   :  { %4620 = vsyncpa [#allocation6], 1 }
 0xfb8   :  { %4621 = vsyncpa [#allocation9], 1 }
 0xfb9   :  { %4622 = vsyncpa [#allocation4], 1 }
 0xfba   :  { %4624 = vsyncpa [#allocation4 + $0x1], 1 }

</bundles_post_ra>
